<compile_context>
chip_gen: v7x
topology: tpu7x:2x2x1
jax: 0.10.0
libtpu: 0.0.40
codegen_flags: <defaults>
</compile_context>

<pallas_src>
import jax
import jax.numpy as jnp
from jax.experimental import pallas as pl
from jax.experimental.pallas import tpu as pltpu

SELU_ALPHA = 1.6732632423543772848170429916717
SELU_SCALE = 1.0507009873554804934193349852946

TIME_VALUES = ['wday', 'month', 'event_name_1_num', 'event_type_1_num',
               'event_name_2_num', 'event_type_2_num', 'wk', 'sell_price']


def _round_up(x, m):
    return (x + m - 1) // m * m


def _decoder_kernel(x_ref, h0_ref, wi_ref, wh_ref, bgi_ref, aux_ref, bl_ref,
                    out_ref, gi_ref, hs_ref):
    """Full GRU + Linear + SELU for one batch block (one grid step per block).

    x_ref   : (T*TB, F)    bf16, time-major rows (rows [t*TB, (t+1)*TB) = step t)
    h0_ref  : (TB, Hp)     f32
    wi_ref  : (F, 3*Hp)    bf16, fused [W_ir | W_iz | W_in]^T (zero-padded to Hp)
    wh_ref  : (Hp, 3*Hp)   bf16, fused [W_hr | W_hz | W_hn]^T
    bgi_ref : (1, 3*Hp)    f32, fused [b_ir+b_hr | b_iz+b_hz | b_in]
    aux_ref : (2, Hp)      f32, row 0 = b_hn, row 1 = linear weight row
    bl_ref  : (1,)         f32 in SMEM, linear bias
    out_ref : (TB, T)      f32
    gi_ref  : (T*TB, 3*Hp) f32 scratch (input-side gates, all steps)
    hs_ref  : (T, TB, Hp)  f32 scratch (hidden states, all steps)
    """
    TB, T = out_ref.shape
    Hp = h0_ref.shape[1]

    # Input-side gates for ALL time steps: one fused MXU matmul (bf16 operands,
    # f32 accumulate), r/z biases and b_in pre-folded into bgi.
    gi_ref[...] = jnp.dot(x_ref[...], wi_ref[...],
                          preferred_element_type=jnp.float32) + bgi_ref[...]

    # Hoist loop invariants (JAX does not CSE broadcasts inside the loop).
    whh = wh_ref[...]                       # (Hp, 3Hp) bf16, resident
    b_hn = aux_ref[0:1, :]                  # (1, Hp)  stays inside r*(...) term
    w_out = aux_ref[1:2, :]                 # (1, Hp)  Linear(H->1) weight row

    def step(t, h):
        row = pl.multiple_of(t * TB, TB)
        gi = gi_ref[pl.ds(row, TB), :]                           # (TB, 3Hp) f32
        # One fused recurrent matmul instead of three (bf16 in, f32 accumulate).
        gh = jnp.dot(h.astype(jnp.bfloat16), whh,
                     preferred_element_type=jnp.float32)         # (TB, 3Hp) f32
        r = jax.nn.sigmoid(gi[:, 0 * Hp:1 * Hp] + gh[:, 0 * Hp:1 * Hp])
        z = jax.nn.sigmoid(gi[:, 1 * Hp:2 * Hp] + gh[:, 1 * Hp:2 * Hp])
        n = jnp.tanh(gi[:, 2 * Hp:3 * Hp] + r * (gh[:, 2 * Hp:3 * Hp] + b_hn))
        h_new = (1.0 - z) * n + z * h
        hs_ref[t] = h_new                   # defer the output projection
        return h_new

    jax.lax.fori_loop(0, T, step, h0_ref[...], unroll=min(T, 8))

    # Deferred Linear(H->1) + bias + SELU over the whole hidden slab, written as
    # one lane-dense (TB, T) block (single reduce + single small transpose).
    hs = hs_ref[...]                                             # (T, TB, Hp)
    y = jnp.sum(hs * w_out[None], axis=-1)                       # (T, TB)
    y = y.T + bl_ref[0]                                          # (TB, T)
    out_ref[...] = SELU_SCALE * jnp.where(
        y > 0.0, y, SELU_ALPHA * (jnp.exp(jnp.minimum(y, 0.0)) - 1.0))


def decoder_forward(inputs, hidden_input, params):
    """inputs: dict of (B, T) arrays keyed by TIME_VALUES; hidden_input: (B, H)."""
    B, T = inputs[TIME_VALUES[0]].shape
    F = len(TIME_VALUES)
    H = hidden_input.shape[1]

    f32, bf16 = jnp.float32, jnp.bfloat16
    Hp = _round_up(H, 128)                    # lane-aligned hidden size
    TB = min(_round_up(B, 8), 128)            # sublane-aligned batch tile
    B_pad = _round_up(B, TB)
    n_blk = B_pad // TB

    # ---- Pack the 8 (B, T) features into per-block time-major slabs. ----
    # TODO(synk): at production sizes pass the raw (B,T) features (or one
    #   pre-stacked array) and assemble the time-major slab in-kernel to avoid
    #   this extra HBM pass over the input.
    xs = jnp.stack([inputs[k].astype(f32) for k in TIME_VALUES], axis=-1)  # (B,T,F)
    xs = jnp.pad(xs, ((0, B_pad - B), (0, 0), (0, 0)))
    x_blk = (xs.transpose(1, 0, 2)                          # (T, B_pad, F)
               .reshape(T, n_blk, TB, F)
               .transpose(1, 0, 2, 3)                       # (n_blk, T, TB, F)
               .reshape(n_blk, T * TB, F)
               .astype(bf16))

    # ---- Fused, padded, lane-aligned weights (PyTorch gate order [r, z, n]). ----
    wih = params['weight_ih'].astype(f32)     # (3H, F)
    whh = params['weight_hh'].astype(f32)     # (3H, H)
    bih = params['bias_ih'].astype(f32)       # (3H,)
    bhh = params['bias_hh'].astype(f32)       # (3H,)

    def _pad_wi(g):                                          # (F, Hp)
        return jnp.pad(wih[g * H:(g + 1) * H].T, ((0, 0), (0, Hp - H)))

    def _pad_wh(g):                                          # (Hp, Hp)
        return jnp.pad(whh[g * H:(g + 1) * H].T, ((0, Hp - H), (0, Hp - H)))

    def _pad_vec(v):                                         # (Hp,)
        return jnp.pad(v, (0, Hp - H))

    wi_fused = jnp.concatenate([_pad_wi(0), _pad_wi(1), _pad_wi(2)],
                               axis=1).astype(bf16)          # (F, 3Hp)
    wh_fused = jnp.concatenate([_pad_wh(0), _pad_wh(1), _pad_wh(2)],
                               axis=1).astype(bf16)          # (Hp, 3Hp)

    b_gi = jnp.concatenate([_pad_vec(bih[0:H] + bhh[0:H]),          # r (folded)
                            _pad_vec(bih[H:2 * H] + bhh[H:2 * H]),  # z (folded)
                            _pad_vec(bih[2 * H:3 * H])]             # n: b_in only
                           )[None, :]                        # (1, 3Hp) f32
    aux = jnp.stack([_pad_vec(bhh[2 * H:3 * H]),                    # b_hn
                     _pad_vec(params['linear_w'].astype(f32)[0])],  # linear row
                    axis=0)                                  # (2, Hp) f32
    bl = params['linear_b'].astype(f32).reshape(1)           # (1,) -> SMEM
    h0_p = jnp.pad(hidden_input.astype(f32),
                   ((0, B_pad - B), (0, Hp - H)))            # (B_pad, Hp)

    grid_spec = pltpu.PrefetchScalarGridSpec(
        num_scalar_prefetch=0,
        grid=(n_blk,),                                        # batch blocks
        in_specs=[
            pl.BlockSpec((None, T * TB, F), lambda i: (i, 0, 0)),   # x block
            pl.BlockSpec((TB, Hp), lambda i: (i, 0)),               # h0 block
            pl.BlockSpec((F, 3 * Hp), lambda i: (0, 0)),            # W_i fused
            pl.BlockSpec((Hp, 3 * Hp), lambda i: (0, 0)),           # W_h fused
            pl.BlockSpec((1, 3 * Hp), lambda i: (0, 0)),            # fused gi bias
            pl.BlockSpec((2, Hp), lambda i: (0, 0)),                # [b_hn; w_lin]
            pl.BlockSpec(memory_space=pltpu.MemorySpace.SMEM),      # linear bias
        ],
        out_specs=pl.BlockSpec((TB, T), lambda i: (i, 0)),          # lane-dense
        scratch_shapes=[
            pltpu.VMEM((T * TB, 3 * Hp), jnp.float32),   # gi for all steps
            pltpu.VMEM((T, TB, Hp), jnp.float32),        # h   for all steps
        ],
    )

    out = pl.pallas_call(
        _decoder_kernel,
        out_shape=jax.ShapeDtypeStruct((B_pad, T), jnp.float32),
        grid_spec=grid_spec,
        compiler_params=pltpu.CompilerParams(
            dimension_semantics=("parallel",),            # v7x: split blocks on TCs
            vmem_limit_bytes=48 * 1024 * 1024),
    )(x_blk, h0_p, wi_fused, wh_fused, b_gi, aux, bl)

    return out[:B]                                            # (B, T)


def decoder_reference(inputs, hidden_input, params):
    """Pure-JAX f32 reference (mirrors torch.nn.GRU / Linear / selu)."""
    input_ts = jnp.concatenate(
        [inputs[k].astype(jnp.float32)[..., None] for k in TIME_VALUES], axis=-1)
    H = hidden_input.shape[1]
    wih = params['weight_ih'].astype(jnp.float32)
    whh = params['weight_hh'].astype(jnp.float32)
    bih = params['bias_ih'].astype(jnp.float32)
    bhh = params['bias_hh'].astype(jnp.float32)

    def step(h, x_t):
        gi = x_t @ wih.T + bih
        gh = h @ whh.T + bhh
        i_r, i_z, i_n = gi[:, :H], gi[:, H:2 * H], gi[:, 2 * H:]
        h_r, h_z, h_n = gh[:, :H], gh[:, H:2 * H], gh[:, 2 * H:]
        r = jax.nn.sigmoid(i_r + h_r)
        z = jax.nn.sigmoid(i_z + h_z)
        n = jnp.tanh(i_n + r * h_n)
        h_new = (1.0 - z) * n + z * h
        return h_new, h_new

    xs = jnp.transpose(input_ts, (1, 0, 2))
    _, hs = jax.lax.scan(step, hidden_input.astype(jnp.float32), xs)
    out = jnp.transpose(hs, (1, 0, 2))                        # (B, T, H)
    y = out @ params['linear_w'].astype(jnp.float32).T + params['linear_b']
    y = SELU_SCALE * jnp.where(y > 0, y, SELU_ALPHA * (jnp.exp(y) - 1.0))
    return y[..., 0]


if __name__ == "__main__":
    B, T, H = 2, 8, 32
    F = len(TIME_VALUES)

    key = jax.random.PRNGKey(0)
    ks = jax.random.split(key, 8 + F + 1)

    # deterministic synthetic parameters (shapes match nn.GRU(F, H) + nn.Linear(H, 1))
    params = {
        'weight_ih': 0.2 * jax.random.normal(ks[0], (3 * H, F), jnp.float32),
        'weight_hh': 0.2 * jax.random.normal(ks[1], (3 * H, H), jnp.float32),
        'bias_ih': 0.1 * jax.random.normal(ks[2], (3 * H,), jnp.float32),
        'bias_hh': 0.1 * jax.random.normal(ks[3], (3 * H,), jnp.float32),
        'linear_w': 0.2 * jax.random.normal(ks[4], (1, H), jnp.float32),
        'linear_b': 0.1 * jax.random.normal(ks[5], (1,), jnp.float32),
    }

    # inputs dict of (B, T) time features (as in the PyTorch forward)
    inputs = {k: jax.random.normal(ks[8 + i], (B, T), jnp.float32)
              for i, k in enumerate(TIME_VALUES)}
    hidden_input = jax.random.normal(ks[6], (B, H), jnp.float32)

    out = decoder_forward(inputs, hidden_input, params)
    out = jax.block_until_ready(out)
    assert out.shape == (B, T)
    assert bool(jnp.all(jnp.isfinite(out)))

    # bf16 MXU operands (f32 accumulation / gate math) vs. the pure-f32
    # reference: tolerance loosened per the perf-review correctness note.
    ref = decoder_reference(inputs, hidden_input, params)
    assert jnp.allclose(out, ref, atol=5e-2, rtol=5e-2), "mismatch vs reference"

    print("KERNEL_OK")
</pallas_src>

<mosaic_0001>
module attributes {stable_mosaic.version = 11 : i64} {
  func.func @_decoder_kernel(%arg0: i32, %arg1: memref<1x64x8xbf16, #tpu.memory_space<vmem>>, %arg2: memref<8x128xf32, #tpu.memory_space<vmem>>, %arg3: memref<8x384xbf16, #tpu.memory_space<vmem>>, %arg4: memref<128x384xbf16, #tpu.memory_space<vmem>>, %arg5: memref<1x384xf32, #tpu.memory_space<vmem>>, %arg6: memref<2x128xf32, #tpu.memory_space<vmem>>, %arg7: memref<1xf32, #tpu.memory_space<smem>>, %arg8: memref<8x8xf32, #tpu.memory_space<vmem>>, %arg9: memref<64x384xf32, #tpu.memory_space<vmem>>, %arg10: memref<8x8x128xf32, #tpu.memory_space<vmem>>) attributes {dimension_semantics = [#tpu.dimension_semantics<parallel>], iteration_bounds = array<i64: 1>, scalar_prefetch = 0 : i64, scratch_operands = 2 : i64, tpu.core_type = #tpu.core_type<tc>, window_params = [{transform_indices = @transform_0, window_bounds = array<i64: 1, 64, 8>}, {transform_indices = @transform_1, window_bounds = array<i64: 8, 128>}, {pipeline_mode = #tpu.pipeline_mode<synchronous>, transform_indices = @transform_2, window_bounds = array<i64: 8, 384>}, {pipeline_mode = #tpu.pipeline_mode<synchronous>, transform_indices = @transform_3, window_bounds = array<i64: 128, 384>}, {pipeline_mode = #tpu.pipeline_mode<synchronous>, transform_indices = @transform_4, window_bounds = array<i64: 1, 384>}, {pipeline_mode = #tpu.pipeline_mode<synchronous>, transform_indices = @transform_5, window_bounds = array<i64: 2, 128>}, {transform_indices = @transform_6, window_bounds = array<i64: 1>}, {transform_indices = @transform_7, window_bounds = array<i64: 8, 8>}]} {
    %c0 = arith.constant 0 : index
    %c0_0 = arith.constant 0 : index
    %c0_1 = arith.constant 0 : index
    %0 = vector.load %arg1[%c0, %c0_0, %c0_1] : memref<1x64x8xbf16, #tpu.memory_space<vmem>>, vector<1x64x8xbf16>
    %1 = vector.shape_cast %0 : vector<1x64x8xbf16> to vector<64x8xbf16>
    %c0_2 = arith.constant 0 : index
    %c0_3 = arith.constant 0 : index
    %2 = vector.load %arg3[%c0_2, %c0_3] : memref<8x384xbf16, #tpu.memory_space<vmem>>, vector<8x384xbf16>
    %cst = arith.constant dense<0.000000e+00> : vector<64x384xf32>
    %3 = tpu.matmul %1, %2, %cst {dimension_numbers = #tpu.dot_dimension_numbers<[1], [0], [0], [1], [0, 0, 1, 1], [], []>} : vector<64x8xbf16>, vector<8x384xbf16>, vector<64x384xf32> -> vector<64x384xf32>
    %c0_4 = arith.constant 0 : index
    %c0_5 = arith.constant 0 : index
    %4 = vector.load %arg5[%c0_4, %c0_5] : memref<1x384xf32, #tpu.memory_space<vmem>>, vector<1x384xf32>
    %5 = vector.broadcast %4 : vector<1x384xf32> to vector<64x384xf32>
    %6 = arith.addf %3, %5 : vector<64x384xf32>
    %c0_6 = arith.constant 0 : index
    %c0_7 = arith.constant 0 : index
    %7 = vector.load %arg9[%c0_6, %c0_7] : memref<64x384xf32, #tpu.memory_space<vmem>>, vector<64x384xf32>
    tpu.vector_store %arg9[%c0_6, %c0_7], %6 {strides = array<i32>} : memref<64x384xf32, #tpu.memory_space<vmem>>, vector<64x384xf32>,
    %c0_8 = arith.constant 0 : index
    %c0_9 = arith.constant 0 : index
    %8 = vector.load %arg4[%c0_8, %c0_9] : memref<128x384xbf16, #tpu.memory_space<vmem>>, vector<128x384xbf16>
    %c0_10 = arith.constant 0 : index
    %c0_11 = arith.constant 0 : index
    %9 = vector.load %arg6[%c0_10, %c0_11] : memref<2x128xf32, #tpu.memory_space<vmem>>, vector<1x128xf32>
    %c1 = arith.constant 1 : index
    %c0_12 = arith.constant 0 : index
    %10 = vector.load %arg6[%c1, %c0_12] : memref<2x128xf32, #tpu.memory_space<vmem>>, vector<1x128xf32>
    %c0_13 = arith.constant 0 : index
    %c0_14 = arith.constant 0 : index
    %11 = vector.load %arg2[%c0_13, %c0_14] : memref<8x128xf32, #tpu.memory_space<vmem>>, vector<8x128xf32>
    %c0_i32 = arith.constant 0 : i32
    %c8_i32 = arith.constant 8 : i32
    %12 = arith.muli %c0_i32, %c8_i32 : i32
    %13 = tpu.assume_multiple %12, 8 : i32
    %14 = arith.index_cast %13 : i32 to index
    %c0_15 = arith.constant 0 : index
    %15 = vector.load %arg9[%14, %c0_15] : memref<64x384xf32, #tpu.memory_space<vmem>>, vector<8x384xf32>
    %16 = arith.truncf %11 : vector<8x128xf32> to vector<8x128xbf16>
    %cst_16 = arith.constant dense<0.000000e+00> : vector<8x384xf32>
    %17 = tpu.matmul %16, %8, %cst_16 {dimension_numbers = #tpu.dot_dimension_numbers<[1], [0], [0], [1], [0, 0, 1, 1], [], []>} : vector<8x128xbf16>, vector<128x384xbf16>, vector<8x384xf32> -> vector<8x384xf32>
    %18 = vector.extract_strided_slice %15 {offsets = [0, 0], sizes = [8, 128], strides = [1, 1]} : vector<8x384xf32> to vector<8x128xf32>
    %19 = vector.extract_strided_slice %17 {offsets = [0, 0], sizes = [8, 128], strides = [1, 1]} : vector<8x384xf32> to vector<8x128xf32>
    %20 = arith.addf %18, %19 : vector<8x128xf32>
    %21 = arith.negf %20 : vector<8x128xf32>
    %22 = math.exp %21 : vector<8x128xf32>
    %cst_17 = arith.constant 1.000000e+00 : f32
    %23 = vector.broadcast %cst_17 : f32 to vector<8x128xf32>
    %24 = arith.addf %23, %22 : vector<8x128xf32>
    %25 = arith.divf %23, %24 : vector<8x128xf32>
    %26 = vector.extract_strided_slice %15 {offsets = [0, 128], sizes = [8, 128], strides = [1, 1]} : vector<8x384xf32> to vector<8x128xf32>
    %27 = vector.extract_strided_slice %17 {offsets = [0, 128], sizes = [8, 128], strides = [1, 1]} : vector<8x384xf32> to vector<8x128xf32>
    %28 = arith.addf %26, %27 : vector<8x128xf32>
    %29 = arith.negf %28 : vector<8x128xf32>
    %30 = math.exp %29 : vector<8x128xf32>
    %cst_18 = arith.constant 1.000000e+00 : f32
    %31 = vector.broadcast %cst_18 : f32 to vector<8x128xf32>
    %32 = arith.addf %31, %30 : vector<8x128xf32>
    %33 = arith.divf %31, %32 : vector<8x128xf32>
    %34 = vector.extract_strided_slice %15 {offsets = [0, 256], sizes = [8, 128], strides = [1, 1]} : vector<8x384xf32> to vector<8x128xf32>
    %35 = vector.extract_strided_slice %17 {offsets = [0, 256], sizes = [8, 128], strides = [1, 1]} : vector<8x384xf32> to vector<8x128xf32>
    %36 = vector.broadcast %9 : vector<1x128xf32> to vector<8x128xf32>
    %37 = arith.addf %35, %36 : vector<8x128xf32>
    %38 = arith.mulf %25, %37 : vector<8x128xf32>
    %39 = arith.addf %34, %38 : vector<8x128xf32>
    %40 = math.tanh %39 : vector<8x128xf32>
    %cst_19 = arith.constant 1.000000e+00 : f32
    %41 = vector.broadcast %cst_19 : f32 to vector<8x128xf32>
    %42 = arith.subf %41, %33 : vector<8x128xf32>
    %43 = arith.mulf %42, %40 : vector<8x128xf32>
    %44 = arith.mulf %33, %11 : vector<8x128xf32>
    %45 = arith.addf %43, %44 : vector<8x128xf32>
    %46 = arith.index_cast %c0_i32 : i32 to index
    %c0_20 = arith.constant 0 : index
    %c0_21 = arith.constant 0 : index
    %47 = vector.load %arg10[%46, %c0_20, %c0_21] : memref<8x8x128xf32, #tpu.memory_space<vmem>>, vector<1x8x128xf32>
    %48 = vector.shape_cast %47 : vector<1x8x128xf32> to vector<8x128xf32>
    %49 = vector.shape_cast %45 : vector<8x128xf32> to vector<1x8x128xf32>
    tpu.vector_store %arg10[%46, %c0_20, %c0_21], %49 {strides = array<i32>} : memref<8x8x128xf32, #tpu.memory_space<vmem>>, vector<1x8x128xf32>,
    %c1_i32 = arith.constant 1 : i32
    %c8_i32_22 = arith.constant 8 : i32
    %50 = arith.muli %c1_i32, %c8_i32_22 : i32
    %51 = tpu.assume_multiple %50, 8 : i32
    %52 = arith.index_cast %51 : i32 to index
    %c0_23 = arith.constant 0 : index
    %53 = vector.load %arg9[%52, %c0_23] : memref<64x384xf32, #tpu.memory_space<vmem>>, vector<8x384xf32>
    %54 = arith.truncf %45 : vector<8x128xf32> to vector<8x128xbf16>
    %cst_24 = arith.constant dense<0.000000e+00> : vector<8x384xf32>
    %55 = tpu.matmul %54, %8, %cst_24 {dimension_numbers = #tpu.dot_dimension_numbers<[1], [0], [0], [1], [0, 0, 1, 1], [], []>} : vector<8x128xbf16>, vector<128x384xbf16>, vector<8x384xf32> -> vector<8x384xf32>
    %56 = vector.extract_strided_slice %53 {offsets = [0, 0], sizes = [8, 128], strides = [1, 1]} : vector<8x384xf32> to vector<8x128xf32>
    %57 = vector.extract_strided_slice %55 {offsets = [0, 0], sizes = [8, 128], strides = [1, 1]} : vector<8x384xf32> to vector<8x128xf32>
    %58 = arith.addf %56, %57 : vector<8x128xf32>
    %59 = arith.negf %58 : vector<8x128xf32>
    %60 = math.exp %59 : vector<8x128xf32>
    %cst_25 = arith.constant 1.000000e+00 : f32
    %61 = vector.broadcast %cst_25 : f32 to vector<8x128xf32>
    %62 = arith.addf %61, %60 : vector<8x128xf32>
    %63 = arith.divf %61, %62 : vector<8x128xf32>
    %64 = vector.extract_strided_slice %53 {offsets = [0, 128], sizes = [8, 128], strides = [1, 1]} : vector<8x384xf32> to vector<8x128xf32>
    %65 = vector.extract_strided_slice %55 {offsets = [0, 128], sizes = [8, 128], strides = [1, 1]} : vector<8x384xf32> to vector<8x128xf32>
    %66 = arith.addf %64, %65 : vector<8x128xf32>
    %67 = arith.negf %66 : vector<8x128xf32>
    %68 = math.exp %67 : vector<8x128xf32>
    %cst_26 = arith.constant 1.000000e+00 : f32
    %69 = vector.broadcast %cst_26 : f32 to vector<8x128xf32>
    %70 = arith.addf %69, %68 : vector<8x128xf32>
    %71 = arith.divf %69, %70 : vector<8x128xf32>
    %72 = vector.extract_strided_slice %53 {offsets = [0, 256], sizes = [8, 128], strides = [1, 1]} : vector<8x384xf32> to vector<8x128xf32>
    %73 = vector.extract_strided_slice %55 {offsets = [0, 256], sizes = [8, 128], strides = [1, 1]} : vector<8x384xf32> to vector<8x128xf32>
    %74 = vector.broadcast %9 : vector<1x128xf32> to vector<8x128xf32>
    %75 = arith.addf %73, %74 : vector<8x128xf32>
    %76 = arith.mulf %63, %75 : vector<8x128xf32>
    %77 = arith.addf %72, %76 : vector<8x128xf32>
    %78 = math.tanh %77 : vector<8x128xf32>
    %cst_27 = arith.constant 1.000000e+00 : f32
    %79 = vector.broadcast %cst_27 : f32 to vector<8x128xf32>
    %80 = arith.subf %79, %71 : vector<8x128xf32>
    %81 = arith.mulf %80, %78 : vector<8x128xf32>
    %82 = arith.mulf %71, %45 : vector<8x128xf32>
    %83 = arith.addf %81, %82 : vector<8x128xf32>
    %84 = arith.index_cast %c1_i32 : i32 to index
    %c0_28 = arith.constant 0 : index
    %c0_29 = arith.constant 0 : index
    %85 = vector.load %arg10[%84, %c0_28, %c0_29] : memref<8x8x128xf32, #tpu.memory_space<vmem>>, vector<1x8x128xf32>
    %86 = vector.shape_cast %85 : vector<1x8x128xf32> to vector<8x128xf32>
    %87 = vector.shape_cast %83 : vector<8x128xf32> to vector<1x8x128xf32>
    tpu.vector_store %arg10[%84, %c0_28, %c0_29], %87 {strides = array<i32>} : memref<8x8x128xf32, #tpu.memory_space<vmem>>, vector<1x8x128xf32>,
    %c2_i32 = arith.constant 2 : i32
    %c8_i32_30 = arith.constant 8 : i32
    %88 = arith.muli %c2_i32, %c8_i32_30 : i32
    %89 = tpu.assume_multiple %88, 8 : i32
    %90 = arith.index_cast %89 : i32 to index
    %c0_31 = arith.constant 0 : index
    %91 = vector.load %arg9[%90, %c0_31] : memref<64x384xf32, #tpu.memory_space<vmem>>, vector<8x384xf32>
    %92 = arith.truncf %83 : vector<8x128xf32> to vector<8x128xbf16>
    %cst_32 = arith.constant dense<0.000000e+00> : vector<8x384xf32>
    %93 = tpu.matmul %92, %8, %cst_32 {dimension_numbers = #tpu.dot_dimension_numbers<[1], [0], [0], [1], [0, 0, 1, 1], [], []>} : vector<8x128xbf16>, vector<128x384xbf16>, vector<8x384xf32> -> vector<8x384xf32>
    %94 = vector.extract_strided_slice %91 {offsets = [0, 0], sizes = [8, 128], strides = [1, 1]} : vector<8x384xf32> to vector<8x128xf32>
    %95 = vector.extract_strided_slice %93 {offsets = [0, 0], sizes = [8, 128], strides = [1, 1]} : vector<8x384xf32> to vector<8x128xf32>
    %96 = arith.addf %94, %95 : vector<8x128xf32>
    %97 = arith.negf %96 : vector<8x128xf32>
    %98 = math.exp %97 : vector<8x128xf32>
    %cst_33 = arith.constant 1.000000e+00 : f32
    %99 = vector.broadcast %cst_33 : f32 to vector<8x128xf32>
    %100 = arith.addf %99, %98 : vector<8x128xf32>
    %101 = arith.divf %99, %100 : vector<8x128xf32>
    %102 = vector.extract_strided_slice %91 {offsets = [0, 128], sizes = [8, 128], strides = [1, 1]} : vector<8x384xf32> to vector<8x128xf32>
    %103 = vector.extract_strided_slice %93 {offsets = [0, 128], sizes = [8, 128], strides = [1, 1]} : vector<8x384xf32> to vector<8x128xf32>
    %104 = arith.addf %102, %103 : vector<8x128xf32>
    %105 = arith.negf %104 : vector<8x128xf32>
    %106 = math.exp %105 : vector<8x128xf32>
    %cst_34 = arith.constant 1.000000e+00 : f32
    %107 = vector.broadcast %cst_34 : f32 to vector<8x128xf32>
    %108 = arith.addf %107, %106 : vector<8x128xf32>
    %109 = arith.divf %107, %108 : vector<8x128xf32>
    %110 = vector.extract_strided_slice %91 {offsets = [0, 256], sizes = [8, 128], strides = [1, 1]} : vector<8x384xf32> to vector<8x128xf32>
    %111 = vector.extract_strided_slice %93 {offsets = [0, 256], sizes = [8, 128], strides = [1, 1]} : vector<8x384xf32> to vector<8x128xf32>
    %112 = vector.broadcast %9 : vector<1x128xf32> to vector<8x128xf32>
    %113 = arith.addf %111, %112 : vector<8x128xf32>
    %114 = arith.mulf %101, %113 : vector<8x128xf32>
    %115 = arith.addf %110, %114 : vector<8x128xf32>
    %116 = math.tanh %115 : vector<8x128xf32>
    %cst_35 = arith.constant 1.000000e+00 : f32
    %117 = vector.broadcast %cst_35 : f32 to vector<8x128xf32>
    %118 = arith.subf %117, %109 : vector<8x128xf32>
    %119 = arith.mulf %118, %116 : vector<8x128xf32>
    %120 = arith.mulf %109, %83 : vector<8x128xf32>
    %121 = arith.addf %119, %120 : vector<8x128xf32>
    %122 = arith.index_cast %c2_i32 : i32 to index
    %c0_36 = arith.constant 0 : index
    %c0_37 = arith.constant 0 : index
    %123 = vector.load %arg10[%122, %c0_36, %c0_37] : memref<8x8x128xf32, #tpu.memory_space<vmem>>, vector<1x8x128xf32>
    %124 = vector.shape_cast %123 : vector<1x8x128xf32> to vector<8x128xf32>
    %125 = vector.shape_cast %121 : vector<8x128xf32> to vector<1x8x128xf32>
    tpu.vector_store %arg10[%122, %c0_36, %c0_37], %125 {strides = array<i32>} : memref<8x8x128xf32, #tpu.memory_space<vmem>>, vector<1x8x128xf32>,
    %c3_i32 = arith.constant 3 : i32
    %c8_i32_38 = arith.constant 8 : i32
    %126 = arith.muli %c3_i32, %c8_i32_38 : i32
    %127 = tpu.assume_multiple %126, 8 : i32
    %128 = arith.index_cast %127 : i32 to index
    %c0_39 = arith.constant 0 : index
    %129 = vector.load %arg9[%128, %c0_39] : memref<64x384xf32, #tpu.memory_space<vmem>>, vector<8x384xf32>
    %130 = arith.truncf %121 : vector<8x128xf32> to vector<8x128xbf16>
    %cst_40 = arith.constant dense<0.000000e+00> : vector<8x384xf32>
    %131 = tpu.matmul %130, %8, %cst_40 {dimension_numbers = #tpu.dot_dimension_numbers<[1], [0], [0], [1], [0, 0, 1, 1], [], []>} : vector<8x128xbf16>, vector<128x384xbf16>, vector<8x384xf32> -> vector<8x384xf32>
    %132 = vector.extract_strided_slice %129 {offsets = [0, 0], sizes = [8, 128], strides = [1, 1]} : vector<8x384xf32> to vector<8x128xf32>
    %133 = vector.extract_strided_slice %131 {offsets = [0, 0], sizes = [8, 128], strides = [1, 1]} : vector<8x384xf32> to vector<8x128xf32>
    %134 = arith.addf %132, %133 : vector<8x128xf32>
    %135 = arith.negf %134 : vector<8x128xf32>
    %136 = math.exp %135 : vector<8x128xf32>
    %cst_41 = arith.constant 1.000000e+00 : f32
    %137 = vector.broadcast %cst_41 : f32 to vector<8x128xf32>
    %138 = arith.addf %137, %136 : vector<8x128xf32>
    %139 = arith.divf %137, %138 : vector<8x128xf32>
    %140 = vector.extract_strided_slice %129 {offsets = [0, 128], sizes = [8, 128], strides = [1, 1]} : vector<8x384xf32> to vector<8x128xf32>
    %141 = vector.extract_strided_slice %131 {offsets = [0, 128], sizes = [8, 128], strides = [1, 1]} : vector<8x384xf32> to vector<8x128xf32>
    %142 = arith.addf %140, %141 : vector<8x128xf32>
    %143 = arith.negf %142 : vector<8x128xf32>
    %144 = math.exp %143 : vector<8x128xf32>
    %cst_42 = arith.constant 1.000000e+00 : f32
    %145 = vector.broadcast %cst_42 : f32 to vector<8x128xf32>
    %146 = arith.addf %145, %144 : vector<8x128xf32>
    %147 = arith.divf %145, %146 : vector<8x128xf32>
    %148 = vector.extract_strided_slice %129 {offsets = [0, 256], sizes = [8, 128], strides = [1, 1]} : vector<8x384xf32> to vector<8x128xf32>
    %149 = vector.extract_strided_slice %131 {offsets = [0, 256], sizes = [8, 128], strides = [1, 1]} : vector<8x384xf32> to vector<8x128xf32>
    %150 = vector.broadcast %9 : vector<1x128xf32> to vector<8x128xf32>
    %151 = arith.addf %149, %150 : vector<8x128xf32>
    %152 = arith.mulf %139, %151 : vector<8x128xf32>
    %153 = arith.addf %148, %152 : vector<8x128xf32>
    %154 = math.tanh %153 : vector<8x128xf32>
    %cst_43 = arith.constant 1.000000e+00 : f32
    %155 = vector.broadcast %cst_43 : f32 to vector<8x128xf32>
    %156 = arith.subf %155, %147 : vector<8x128xf32>
    %157 = arith.mulf %156, %154 : vector<8x128xf32>
    %158 = arith.mulf %147, %121 : vector<8x128xf32>
    %159 = arith.addf %157, %158 : vector<8x128xf32>
    %160 = arith.index_cast %c3_i32 : i32 to index
    %c0_44 = arith.constant 0 : index
    %c0_45 = arith.constant 0 : index
    %161 = vector.load %arg10[%160, %c0_44, %c0_45] : memref<8x8x128xf32, #tpu.memory_space<vmem>>, vector<1x8x128xf32>
    %162 = vector.shape_cast %161 : vector<1x8x128xf32> to vector<8x128xf32>
    %163 = vector.shape_cast %159 : vector<8x128xf32> to vector<1x8x128xf32>
    tpu.vector_store %arg10[%160, %c0_44, %c0_45], %163 {strides = array<i32>} : memref<8x8x128xf32, #tpu.memory_space<vmem>>, vector<1x8x128xf32>,
    %c4_i32 = arith.constant 4 : i32
    %c8_i32_46 = arith.constant 8 : i32
    %164 = arith.muli %c4_i32, %c8_i32_46 : i32
    %165 = tpu.assume_multiple %164, 8 : i32
    %166 = arith.index_cast %165 : i32 to index
    %c0_47 = arith.constant 0 : index
    %167 = vector.load %arg9[%166, %c0_47] : memref<64x384xf32, #tpu.memory_space<vmem>>, vector<8x384xf32>
    %168 = arith.truncf %159 : vector<8x128xf32> to vector<8x128xbf16>
    %cst_48 = arith.constant dense<0.000000e+00> : vector<8x384xf32>
    %169 = tpu.matmul %168, %8, %cst_48 {dimension_numbers = #tpu.dot_dimension_numbers<[1], [0], [0], [1], [0, 0, 1, 1], [], []>} : vector<8x128xbf16>, vector<128x384xbf16>, vector<8x384xf32> -> vector<8x384xf32>
    %170 = vector.extract_strided_slice %167 {offsets = [0, 0], sizes = [8, 128], strides = [1, 1]} : vector<8x384xf32> to vector<8x128xf32>
    %171 = vector.extract_strided_slice %169 {offsets = [0, 0], sizes = [8, 128], strides = [1, 1]} : vector<8x384xf32> to vector<8x128xf32>
    %172 = arith.addf %170, %171 : vector<8x128xf32>
    %173 = arith.negf %172 : vector<8x128xf32>
    %174 = math.exp %173 : vector<8x128xf32>
    %cst_49 = arith.constant 1.000000e+00 : f32
    %175 = vector.broadcast %cst_49 : f32 to vector<8x128xf32>
    %176 = arith.addf %175, %174 : vector<8x128xf32>
    %177 = arith.divf %175, %176 : vector<8x128xf32>
    %178 = vector.extract_strided_slice %167 {offsets = [0, 128], sizes = [8, 128], strides = [1, 1]} : vector<8x384xf32> to vector<8x128xf32>
    %179 = vector.extract_strided_slice %169 {offsets = [0, 128], sizes = [8, 128], strides = [1, 1]} : vector<8x384xf32> to vector<8x128xf32>
    %180 = arith.addf %178, %179 : vector<8x128xf32>
    %181 = arith.negf %180 : vector<8x128xf32>
    %182 = math.exp %181 : vector<8x128xf32>
    %cst_50 = arith.constant 1.000000e+00 : f32
    %183 = vector.broadcast %cst_50 : f32 to vector<8x128xf32>
    %184 = arith.addf %183, %182 : vector<8x128xf32>
    %185 = arith.divf %183, %184 : vector<8x128xf32>
    %186 = vector.extract_strided_slice %167 {offsets = [0, 256], sizes = [8, 128], strides = [1, 1]} : vector<8x384xf32> to vector<8x128xf32>
    %187 = vector.extract_strided_slice %169 {offsets = [0, 256], sizes = [8, 128], strides = [1, 1]} : vector<8x384xf32> to vector<8x128xf32>
    %188 = vector.broadcast %9 : vector<1x128xf32> to vector<8x128xf32>
    %189 = arith.addf %187, %188 : vector<8x128xf32>
    %190 = arith.mulf %177, %189 : vector<8x128xf32>
    %191 = arith.addf %186, %190 : vector<8x128xf32>
    %192 = math.tanh %191 : vector<8x128xf32>
    %cst_51 = arith.constant 1.000000e+00 : f32
    %193 = vector.broadcast %cst_51 : f32 to vector<8x128xf32>
    %194 = arith.subf %193, %185 : vector<8x128xf32>
    %195 = arith.mulf %194, %192 : vector<8x128xf32>
    %196 = arith.mulf %185, %159 : vector<8x128xf32>
    %197 = arith.addf %195, %196 : vector<8x128xf32>
    %198 = arith.index_cast %c4_i32 : i32 to index
    %c0_52 = arith.constant 0 : index
    %c0_53 = arith.constant 0 : index
    %199 = vector.load %arg10[%198, %c0_52, %c0_53] : memref<8x8x128xf32, #tpu.memory_space<vmem>>, vector<1x8x128xf32>
    %200 = vector.shape_cast %199 : vector<1x8x128xf32> to vector<8x128xf32>
    %201 = vector.shape_cast %197 : vector<8x128xf32> to vector<1x8x128xf32>
    tpu.vector_store %arg10[%198, %c0_52, %c0_53], %201 {strides = array<i32>} : memref<8x8x128xf32, #tpu.memory_space<vmem>>, vector<1x8x128xf32>,
    %c5_i32 = arith.constant 5 : i32
    %c8_i32_54 = arith.constant 8 : i32
    %202 = arith.muli %c5_i32, %c8_i32_54 : i32
    %203 = tpu.assume_multiple %202, 8 : i32
    %204 = arith.index_cast %203 : i32 to index
    %c0_55 = arith.constant 0 : index
    %205 = vector.load %arg9[%204, %c0_55] : memref<64x384xf32, #tpu.memory_space<vmem>>, vector<8x384xf32>
    %206 = arith.truncf %197 : vector<8x128xf32> to vector<8x128xbf16>
    %cst_56 = arith.constant dense<0.000000e+00> : vector<8x384xf32>
    %207 = tpu.matmul %206, %8, %cst_56 {dimension_numbers = #tpu.dot_dimension_numbers<[1], [0], [0], [1], [0, 0, 1, 1], [], []>} : vector<8x128xbf16>, vector<128x384xbf16>, vector<8x384xf32> -> vector<8x384xf32>
    %208 = vector.extract_strided_slice %205 {offsets = [0, 0], sizes = [8, 128], strides = [1, 1]} : vector<8x384xf32> to vector<8x128xf32>
    %209 = vector.extract_strided_slice %207 {offsets = [0, 0], sizes = [8, 128], strides = [1, 1]} : vector<8x384xf32> to vector<8x128xf32>
    %210 = arith.addf %208, %209 : vector<8x128xf32>
    %211 = arith.negf %210 : vector<8x128xf32>
    %212 = math.exp %211 : vector<8x128xf32>
    %cst_57 = arith.constant 1.000000e+00 : f32
    %213 = vector.broadcast %cst_57 : f32 to vector<8x128xf32>
    %214 = arith.addf %213, %212 : vector<8x128xf32>
    %215 = arith.divf %213, %214 : vector<8x128xf32>
    %216 = vector.extract_strided_slice %205 {offsets = [0, 128], sizes = [8, 128], strides = [1, 1]} : vector<8x384xf32> to vector<8x128xf32>
    %217 = vector.extract_strided_slice %207 {offsets = [0, 128], sizes = [8, 128], strides = [1, 1]} : vector<8x384xf32> to vector<8x128xf32>
    %218 = arith.addf %216, %217 : vector<8x128xf32>
    %219 = arith.negf %218 : vector<8x128xf32>
    %220 = math.exp %219 : vector<8x128xf32>
    %cst_58 = arith.constant 1.000000e+00 : f32
    %221 = vector.broadcast %cst_58 : f32 to vector<8x128xf32>
    %222 = arith.addf %221, %220 : vector<8x128xf32>
    %223 = arith.divf %221, %222 : vector<8x128xf32>
    %224 = vector.extract_strided_slice %205 {offsets = [0, 256], sizes = [8, 128], strides = [1, 1]} : vector<8x384xf32> to vector<8x128xf32>
    %225 = vector.extract_strided_slice %207 {offsets = [0, 256], sizes = [8, 128], strides = [1, 1]} : vector<8x384xf32> to vector<8x128xf32>
    %226 = vector.broadcast %9 : vector<1x128xf32> to vector<8x128xf32>
    %227 = arith.addf %225, %226 : vector<8x128xf32>
    %228 = arith.mulf %215, %227 : vector<8x128xf32>
    %229 = arith.addf %224, %228 : vector<8x128xf32>
    %230 = math.tanh %229 : vector<8x128xf32>
    %cst_59 = arith.constant 1.000000e+00 : f32
    %231 = vector.broadcast %cst_59 : f32 to vector<8x128xf32>
    %232 = arith.subf %231, %223 : vector<8x128xf32>
    %233 = arith.mulf %232, %230 : vector<8x128xf32>
    %234 = arith.mulf %223, %197 : vector<8x128xf32>
    %235 = arith.addf %233, %234 : vector<8x128xf32>
    %236 = arith.index_cast %c5_i32 : i32 to index
    %c0_60 = arith.constant 0 : index
    %c0_61 = arith.constant 0 : index
    %237 = vector.load %arg10[%236, %c0_60, %c0_61] : memref<8x8x128xf32, #tpu.memory_space<vmem>>, vector<1x8x128xf32>
    %238 = vector.shape_cast %237 : vector<1x8x128xf32> to vector<8x128xf32>
    %239 = vector.shape_cast %235 : vector<8x128xf32> to vector<1x8x128xf32>
    tpu.vector_store %arg10[%236, %c0_60, %c0_61], %239 {strides = array<i32>} : memref<8x8x128xf32, #tpu.memory_space<vmem>>, vector<1x8x128xf32>,
    %c6_i32 = arith.constant 6 : i32
    %c8_i32_62 = arith.constant 8 : i32
    %240 = arith.muli %c6_i32, %c8_i32_62 : i32
    %241 = tpu.assume_multiple %240, 8 : i32
    %242 = arith.index_cast %241 : i32 to index
    %c0_63 = arith.constant 0 : index
    %243 = vector.load %arg9[%242, %c0_63] : memref<64x384xf32, #tpu.memory_space<vmem>>, vector<8x384xf32>
    %244 = arith.truncf %235 : vector<8x128xf32> to vector<8x128xbf16>
    %cst_64 = arith.constant dense<0.000000e+00> : vector<8x384xf32>
    %245 = tpu.matmul %244, %8, %cst_64 {dimension_numbers = #tpu.dot_dimension_numbers<[1], [0], [0], [1], [0, 0, 1, 1], [], []>} : vector<8x128xbf16>, vector<128x384xbf16>, vector<8x384xf32> -> vector<8x384xf32>
    %246 = vector.extract_strided_slice %243 {offsets = [0, 0], sizes = [8, 128], strides = [1, 1]} : vector<8x384xf32> to vector<8x128xf32>
    %247 = vector.extract_strided_slice %245 {offsets = [0, 0], sizes = [8, 128], strides = [1, 1]} : vector<8x384xf32> to vector<8x128xf32>
    %248 = arith.addf %246, %247 : vector<8x128xf32>
    %249 = arith.negf %248 : vector<8x128xf32>
    %250 = math.exp %249 : vector<8x128xf32>
    %cst_65 = arith.constant 1.000000e+00 : f32
    %251 = vector.broadcast %cst_65 : f32 to vector<8x128xf32>
    %252 = arith.addf %251, %250 : vector<8x128xf32>
    %253 = arith.divf %251, %252 : vector<8x128xf32>
    %254 = vector.extract_strided_slice %243 {offsets = [0, 128], sizes = [8, 128], strides = [1, 1]} : vector<8x384xf32> to vector<8x128xf32>
    %255 = vector.extract_strided_slice %245 {offsets = [0, 128], sizes = [8, 128], strides = [1, 1]} : vector<8x384xf32> to vector<8x128xf32>
    %256 = arith.addf %254, %255 : vector<8x128xf32>
    %257 = arith.negf %256 : vector<8x128xf32>
    %258 = math.exp %257 : vector<8x128xf32>
    %cst_66 = arith.constant 1.000000e+00 : f32
    %259 = vector.broadcast %cst_66 : f32 to vector<8x128xf32>
    %260 = arith.addf %259, %258 : vector<8x128xf32>
    %261 = arith.divf %259, %260 : vector<8x128xf32>
    %262 = vector.extract_strided_slice %243 {offsets = [0, 256], sizes = [8, 128], strides = [1, 1]} : vector<8x384xf32> to vector<8x128xf32>
    %263 = vector.extract_strided_slice %245 {offsets = [0, 256], sizes = [8, 128], strides = [1, 1]} : vector<8x384xf32> to vector<8x128xf32>
    %264 = vector.broadcast %9 : vector<1x128xf32> to vector<8x128xf32>
    %265 = arith.addf %263, %264 : vector<8x128xf32>
    %266 = arith.mulf %253, %265 : vector<8x128xf32>
    %267 = arith.addf %262, %266 : vector<8x128xf32>
    %268 = math.tanh %267 : vector<8x128xf32>
    %cst_67 = arith.constant 1.000000e+00 : f32
    %269 = vector.broadcast %cst_67 : f32 to vector<8x128xf32>
    %270 = arith.subf %269, %261 : vector<8x128xf32>
    %271 = arith.mulf %270, %268 : vector<8x128xf32>
    %272 = arith.mulf %261, %235 : vector<8x128xf32>
    %273 = arith.addf %271, %272 : vector<8x128xf32>
    %274 = arith.index_cast %c6_i32 : i32 to index
    %c0_68 = arith.constant 0 : index
    %c0_69 = arith.constant 0 : index
    %275 = vector.load %arg10[%274, %c0_68, %c0_69] : memref<8x8x128xf32, #tpu.memory_space<vmem>>, vector<1x8x128xf32>
    %276 = vector.shape_cast %275 : vector<1x8x128xf32> to vector<8x128xf32>
    %277 = vector.shape_cast %273 : vector<8x128xf32> to vector<1x8x128xf32>
    tpu.vector_store %arg10[%274, %c0_68, %c0_69], %277 {strides = array<i32>} : memref<8x8x128xf32, #tpu.memory_space<vmem>>, vector<1x8x128xf32>,
    %c7_i32 = arith.constant 7 : i32
    %c8_i32_70 = arith.constant 8 : i32
    %278 = arith.muli %c7_i32, %c8_i32_70 : i32
    %279 = tpu.assume_multiple %278, 8 : i32
    %280 = arith.index_cast %279 : i32 to index
    %c0_71 = arith.constant 0 : index
    %281 = vector.load %arg9[%280, %c0_71] : memref<64x384xf32, #tpu.memory_space<vmem>>, vector<8x384xf32>
    %282 = arith.truncf %273 : vector<8x128xf32> to vector<8x128xbf16>
    %cst_72 = arith.constant dense<0.000000e+00> : vector<8x384xf32>
    %283 = tpu.matmul %282, %8, %cst_72 {dimension_numbers = #tpu.dot_dimension_numbers<[1], [0], [0], [1], [0, 0, 1, 1], [], []>} : vector<8x128xbf16>, vector<128x384xbf16>, vector<8x384xf32> -> vector<8x384xf32>
    %284 = vector.extract_strided_slice %281 {offsets = [0, 0], sizes = [8, 128], strides = [1, 1]} : vector<8x384xf32> to vector<8x128xf32>
    %285 = vector.extract_strided_slice %283 {offsets = [0, 0], sizes = [8, 128], strides = [1, 1]} : vector<8x384xf32> to vector<8x128xf32>
    %286 = arith.addf %284, %285 : vector<8x128xf32>
    %287 = arith.negf %286 : vector<8x128xf32>
    %288 = math.exp %287 : vector<8x128xf32>
    %cst_73 = arith.constant 1.000000e+00 : f32
    %289 = vector.broadcast %cst_73 : f32 to vector<8x128xf32>
    %290 = arith.addf %289, %288 : vector<8x128xf32>
    %291 = arith.divf %289, %290 : vector<8x128xf32>
    %292 = vector.extract_strided_slice %281 {offsets = [0, 128], sizes = [8, 128], strides = [1, 1]} : vector<8x384xf32> to vector<8x128xf32>
    %293 = vector.extract_strided_slice %283 {offsets = [0, 128], sizes = [8, 128], strides = [1, 1]} : vector<8x384xf32> to vector<8x128xf32>
    %294 = arith.addf %292, %293 : vector<8x128xf32>
    %295 = arith.negf %294 : vector<8x128xf32>
    %296 = math.exp %295 : vector<8x128xf32>
    %cst_74 = arith.constant 1.000000e+00 : f32
    %297 = vector.broadcast %cst_74 : f32 to vector<8x128xf32>
    %298 = arith.addf %297, %296 : vector<8x128xf32>
    %299 = arith.divf %297, %298 : vector<8x128xf32>
    %300 = vector.extract_strided_slice %281 {offsets = [0, 256], sizes = [8, 128], strides = [1, 1]} : vector<8x384xf32> to vector<8x128xf32>
    %301 = vector.extract_strided_slice %283 {offsets = [0, 256], sizes = [8, 128], strides = [1, 1]} : vector<8x384xf32> to vector<8x128xf32>
    %302 = vector.broadcast %9 : vector<1x128xf32> to vector<8x128xf32>
    %303 = arith.addf %301, %302 : vector<8x128xf32>
    %304 = arith.mulf %291, %303 : vector<8x128xf32>
    %305 = arith.addf %300, %304 : vector<8x128xf32>
    %306 = math.tanh %305 : vector<8x128xf32>
    %cst_75 = arith.constant 1.000000e+00 : f32
    %307 = vector.broadcast %cst_75 : f32 to vector<8x128xf32>
    %308 = arith.subf %307, %299 : vector<8x128xf32>
    %309 = arith.mulf %308, %306 : vector<8x128xf32>
    %310 = arith.mulf %299, %273 : vector<8x128xf32>
    %311 = arith.addf %309, %310 : vector<8x128xf32>
    %312 = arith.index_cast %c7_i32 : i32 to index
    %c0_76 = arith.constant 0 : index
    %c0_77 = arith.constant 0 : index
    %313 = vector.load %arg10[%312, %c0_76, %c0_77] : memref<8x8x128xf32, #tpu.memory_space<vmem>>, vector<1x8x128xf32>
    %314 = vector.shape_cast %313 : vector<1x8x128xf32> to vector<8x128xf32>
    %315 = vector.shape_cast %311 : vector<8x128xf32> to vector<1x8x128xf32>
    tpu.vector_store %arg10[%312, %c0_76, %c0_77], %315 {strides = array<i32>} : memref<8x8x128xf32, #tpu.memory_space<vmem>>, vector<1x8x128xf32>,
    %c8_i32_78 = arith.constant 8 : i32
    %c0_79 = arith.constant 0 : index
    %c0_80 = arith.constant 0 : index
    %c0_81 = arith.constant 0 : index
    %316 = vector.load %arg10[%c0_79, %c0_80, %c0_81] : memref<8x8x128xf32, #tpu.memory_space<vmem>>, vector<8x8x128xf32>
    %317 = vector.shape_cast %10 : vector<1x128xf32> to vector<1x1x128xf32>
    %318 = vector.broadcast %317 : vector<1x1x128xf32> to vector<8x8x128xf32>
    %319 = arith.mulf %316, %318 : vector<8x8x128xf32>
    %cst_82 = arith.constant dense<0.000000e+00> : vector<8x8xf32>
    %320 = vector.multi_reduction <add>, %319, %cst_82 [2] : vector<8x8x128xf32> to vector<8x8xf32>
    %321 = tpu.transpose %320, [1, 0] : vector<8x8xf32> -> vector<8x8xf32>
    %c0_83 = arith.constant 0 : index
    %322 = memref.load %arg7[%c0_83] : memref<1xf32, #tpu.memory_space<smem>>
    %323 = vector.broadcast %322 : f32 to vector<8x8xf32>
    %324 = arith.addf %321, %323 : vector<8x8xf32>
    %cst_84 = arith.constant 0.000000e+00 : f32
    %325 = vector.broadcast %cst_84 : f32 to vector<8x8xf32>
    %326 = arith.cmpf ogt, %324, %325 : vector<8x8xf32>
    %cst_85 = arith.constant 0.000000e+00 : f32
    %327 = vector.broadcast %cst_85 : f32 to vector<8x8xf32>
    %328 = arith.minimumf %324, %327 : vector<8x8xf32>
    %329 = math.exp %328 : vector<8x8xf32>
    %cst_86 = arith.constant 1.000000e+00 : f32
    %330 = vector.broadcast %cst_86 : f32 to vector<8x8xf32>
    %331 = arith.subf %329, %330 : vector<8x8xf32>
    %cst_87 = arith.constant 1.67326319 : f32
    %332 = vector.broadcast %cst_87 : f32 to vector<8x8xf32>
    %333 = arith.mulf %332, %331 : vector<8x8xf32>
    %334 = arith.select %326, %324, %333 : vector<8x8xi1>, vector<8x8xf32>
    %cst_88 = arith.constant 1.05070102 : f32
    %335 = vector.broadcast %cst_88 : f32 to vector<8x8xf32>
    %336 = arith.mulf %335, %334 : vector<8x8xf32>
    %c0_89 = arith.constant 0 : index
    %c0_90 = arith.constant 0 : index
    %337 = vector.load %arg8[%c0_89, %c0_90] : memref<8x8xf32, #tpu.memory_space<vmem>>, vector<8x8xf32>
    tpu.vector_store %arg8[%c0_89, %c0_90], %336 {strides = array<i32>} : memref<8x8xf32, #tpu.memory_space<vmem>>, vector<8x8xf32>,
    return
  }
  func.func @transform_0(%arg0: i32) -> (i32, i32, i32) {
    %c0_i32 = arith.constant 0 : i32
    %c0_i32_0 = arith.constant 0 : i32
    %c0_i32_1 = arith.constant 0 : i32
    return %arg0, %c0_i32, %c0_i32_0 : i32, i32, i32
  }
  func.func @transform_1(%arg0: i32) -> (i32, i32) {
    %c0_i32 = arith.constant 0 : i32
    %c0_i32_0 = arith.constant 0 : i32
    return %arg0, %c0_i32 : i32, i32
  }
  func.func @transform_2(%arg0: i32) -> (i32, i32) {
    %c0_i32 = arith.constant 0 : i32
    %c0_i32_0 = arith.constant 0 : i32
    %c0_i32_1 = arith.constant 0 : i32
    return %c0_i32, %c0_i32_0 : i32, i32
  }
  func.func @transform_3(%arg0: i32) -> (i32, i32) {
    %c0_i32 = arith.constant 0 : i32
    %c0_i32_0 = arith.constant 0 : i32
    %c0_i32_1 = arith.constant 0 : i32
    return %c0_i32, %c0_i32_0 : i32, i32
  }
  func.func @transform_4(%arg0: i32) -> (i32, i32) {
    %c0_i32 = arith.constant 0 : i32
    %c0_i32_0 = arith.constant 0 : i32
    %c0_i32_1 = arith.constant 0 : i32
    return %c0_i32, %c0_i32_0 : i32, i32
  }
  func.func @transform_5(%arg0: i32) -> (i32, i32) {
    %c0_i32 = arith.constant 0 : i32
    %c0_i32_0 = arith.constant 0 : i32
    %c0_i32_1 = arith.constant 0 : i32
    return %c0_i32, %c0_i32_0 : i32, i32
  }
  func.func @transform_6(%arg0: i32) -> i32 {
    %c0_i32 = arith.constant 0 : i32
    %c0_i32_0 = arith.constant 0 : i32
    return %c0_i32 : i32
  }
  func.func @transform_7(%arg0: i32) -> (i32, i32) {
    %c0_i32 = arith.constant 0 : i32
    %c0_i32_0 = arith.constant 0 : i32
    return %arg0, %c0_i32 : i32, i32
  }
}

</mosaic_0001>

<bundles_post_ra>
// kernel: tpu_custom_call.1
= control target key start
LH: loop header
LB: loop body
LE: loop exit
PB: predicated region body
PF: predicated region fallthrough
CT: control target
= control target key end

     0   :  { %13 = vsyncpa [#allocation6], 0  ;;  %s2593_s0 = inlined_call_operand.vmem [shape: bf16[1,64,8], index: 0, kind: input, shape index: {}]   ;;  %s2594_s1 = inlined_call_operand.vmem [shape: f32[8,128], index: 1, kind: input, shape index: {}]   ;;  %s2595_s2 = inlined_call_operand.vmem [shape: bf16[8,384], index: 2, kind: input, shape index: {}]   ;;  %s2596_s3 = inlined_call_operand.hbm [shape: bf16[128,384], index: 3, kind: input, shape index: {}]   ;;  %s2597_s4 = inlined_call_operand.vmem [shape: f32[1,384], index: 4, kind: input, shape index: {}]   ;;  %s2598_s5 = inlined_call_operand.vmem [shape: f32[2,128], index: 5, kind: input, shape index: {}]   ;;  %s2599_s6 = inlined_call_operand.<no memory space> [shape: f32[1], index: 6, kind: input, shape index: {}]   ;;  %s2600_s7 = inlined_call_operand.hbm [shape: f32[8,8], index: 7, kind: output, shape index: {}]  }
   0x1   :  { %14 = vsyncpa [#allocation7], 0  ;;  %s2011_s24 = smov [#allocation5]   ;;  %s1963_s28 = scalar_lea.hbm %s2596_s3, 3072 }
   0x2   :  { %s26_s25 = sshll.u32 %s2011_s24, 4  ;;  %p1964_p0 = scmp.ne.s32.totalorder %s2596_s3, %s1963_s28  ;;  %s27_s25 = int_to_ptr.vmem [resolvable:$true] %s26_s25 }
   0x3   :  { %p1967_p1 = scmp.lt.u32.totalorder %s1963_s28, %s2596_s3 }
   0x5   :  { %p1969_p2 = pnand %p1967_p1, %p1964_p0 }
   0x7   :  { %1972 = shalt.err (!%p1969_p2)
}
   0x8   :  { %s1973_s10 = scalar_lea.vmem %s27_s25, 3072  ;;  %p1978_p4 = scmp.lt.s32.totalorder %s27_s25, %s27_s25 }
   0x9   :  { %p1974_p3 = scmp.ne.s32.totalorder %s27_s25, %s1973_s10  ;;  %p1979_p5 = scmp.lt.s32.totalorder %s1973_s10, %s1973_s10 }
   0xb   :  { %p1980_p6 = por %p1979_p5, %p1978_p4 }
   0xd   :  { %p1981_p7 = pnand %p1980_p6, %p1974_p3 }
   0xf   :  { %1984 = shalt.err (!%p1981_p7)
}
  0x10   :  { %s2012_s11 = smov 192   ;;  %s2013_s12 = smov 12  }
  0x11   :  { %32 = dma.hbm_to_vmem [thread:$0]  %s2596_s3, 3072, %s27_s25, [#allocation6], %s2012_s11, %s2012_s11, %s2013_s12  }
  0x12   :  { %2007 = dma.done.wait [#allocation6], 3072  }
  0x13   :  { %2008 = vsyncadd [#allocation6], 4294964224  ;;  %v2602_v0 = vmov 0   ;;  %v51_v1 = vld [vmem:[%s2595_s2] sm:$0xff]  ;;  %vm111_vm0 = vcmask 1043456   ;;  %vm98_vm1 = vcmask 64512   ;;  %v2601_v38 = vlaneseq }
  0x14   :  { %153 = vmatprep.mubr.bf16.mxu0 %v2602_v0  ;;  %v1509_v2 = vcombine.high %v51_v1, %v51_v1  ;;  %v1508_v3 = vcombine.low %v51_v1, %v51_v1  ;;  %v1820_v4 = vld [vmem:[%s2593_s0] sm:$0xff]   ;;  %v2085_v8 = vld [vmem:[#allocation5 + $0x1c] ss:$12 sps:$4 sm:$0xff]   ;;  %v2107_v15 = vld [vmem:[#allocation5 + $0x4c] ss:$12 sps:$4 sm:$0xff]   ;;  %v2604_v16 = vmov 0.0  }
  0x15   :  { %v2077_v5 = vld [vmem:[#allocation5 + $0x4] ss:$12 sps:$4 sm:$0xff]   ;;  %1642 = vmatprep.mubr.msk.bf16.mxu1 %vm98_vm1, %v1820_v4  ;;  %v2082_v7 = vld [vmem:[#allocation5] ss:$12 sps:$4 sm:$0xff]   ;;  %v1838_v11 = vld [vmem:[%s2595_s2 + $0x8] ss:$0 sps:$4 sm:$0xff]  }
  0x16   :  { %1511 = vmatprep.subr.msk.bf16.mxu0 %vm111_vm0, %v1509_v2  ;;  %v113_v6 = vsel %vm111_vm0, %v1508_v3, 0  ;;  %v2089_v9 = vld [vmem:[#allocation5 + $0x18] ss:$12 sps:$4 sm:$0xff]   ;;  %v2093_v10 = vld [vmem:[#allocation5 + $0x34] ss:$12 sps:$4 sm:$0xff]   ;;  %v1827_v12 = vld [vmem:[%s2593_s0 + $0x8] sm:$0xff]   ;;  %1810 = vmatprep.subr.msk.bf16.mxu1 %vm111_vm0, %v1838_v11 }
  0x17   :  { %122 = vmatpush1.bf16.msra.mxu0 %v113_v6  ;;  %v2101_v13 = vld [vmem:[#allocation5 + $0x30] ss:$12 sps:$4 sm:$0xff]   ;;  %v119_v14 = vsel %vm111_vm0, %v1838_v11, 0  ;;  %v2111_v17 = vld [vmem:[#allocation5 + $0x8] ss:$12 sps:$4 sm:$0xff]   ;;  %vm2016_vm2 = vmmov 0  }
  0x18   :  { %453 = vmatprep.subr.bf16.mxu0 %v2077_v5  ;;  %1641 = vmatpush3.bf16.msra.mxu1 %v119_v14  ;;  %v2114_v18 = vld [vmem:[#allocation5 + $0x48] ss:$12 sps:$4 sm:$0xff]   ;;  %v2121_v20 = vld [vmem:[#allocation5 + $0x64] ss:$12 sps:$4 sm:$0xff]   ;;  %v2125_v21 = vld [vmem:[#allocation5 + $0x20] ss:$12 sps:$4 sm:$0xff]  }
  0x19   :  { %1650 = vmatprep.subr.bf16.mxu1 %v2604_v16  ;;  %v1834_v19 = vld [vmem:[%s2593_s0 + $0x10] sm:$0xff]   ;;  %v2130_v22 = vld [vmem:[#allocation5 + $0x60] ss:$12 sps:$4 sm:$0xff]   ;;  %v2133_v23 = vld [vmem:[#allocation5 + $0x7c] ss:$12 sps:$4 sm:$0xff]   ;;  %v2232_v39 = vshrl.u32 %v2601_v38, 7 }
  0x1a   :  { %1512 = vmatmul.mubr.msk.bf16.vlgmr.msra.gmra.mrb[0].mxu0 %vm98_vm1, %v1820_v4  ;;  %v2136_v24 = vld [vmem:[#allocation5 + $0x38] ss:$12 sps:$4 sm:$0xff]   ;;  %v2148_v27 = vld [vmem:[#allocation5 + $0x94] ss:$12 sps:$4 sm:$0xff]   ;;  %v2152_v28 = vld [vmem:[#allocation5 + $0x50] ss:$12 sps:$4 sm:$0xff]  }
  0x1b   :  { %454 = vmatpush1.bf16.msra.mxu0 %v2082_v7  ;;  %163 = vmatprep.mubr.bf16.mxu0 %v2602_v0  ;;  %v1842_v25 = vld [vmem:[%s2593_s0 + $0x18] sm:$0xff]   ;;  %v2164_v31 = vld [vmem:[#allocation5 + $0x68] ss:$12 sps:$4 sm:$0xff]   ;;  %v2175_v33 = vld [vmem:[%s2594_s1] sm:$0xff]  ;;  %2607 = vst [vmem:[#allocation11_spill] sm:$0xff] %v2232_v39  ;;  %v57_v40 = vsub.s32 0, %v2232_v39 }
  0x1c   :  { %455 = vmatprep.subr.bf16.mxu0 %v2085_v8  ;;  %1643 = vmatmul.mubr.msk.bf16.vlgmr.msra.gmra.mrb[0].mxu1 %vm98_vm1, %v1827_v12  ;;  %v2144_v26 = vld [vmem:[#allocation5 + $0x78] ss:$12 sps:$4 sm:$0xff]   ;;  %v2158_v29 = vld [vmem:[#allocation5 + $0x90] ss:$12 sps:$4 sm:$0xff]   ;;  %v2169_v32 = vld [vmem:[#allocation5 + $0xa8] ss:$12 sps:$4 sm:$0xff]   ;;  %v324_v35 = vpack.c.bf16 %v2175_v33, %v2175_v33 }
  0x1d   :  { %1651 = vmatpush3.bf16.msra.mxu1 %v2111_v17  ;;  %1646 = vmatprep.mubr.msk.bf16.mxu1 %vm98_vm1, %v1834_v19  ;;  %v2161_v30 = vld [vmem:[#allocation5 + $0xac] ss:$12 sps:$4 sm:$0xff]   ;;  %v2194_v37 = vld [vmem:[#allocation5 + $0xb0] ss:$12 sps:$4 sm:$0xff]   ;;  %v53_v41 = vld [vmem:[%s2597_s4] sm:$0x7] }
  0x1e   :  { %1652 = vmatprep.subr.bf16.mxu1 %v2604_v16  ;;  %v2179_v34 = vld [vmem:[#allocation5 + $0x80] ss:$12 sps:$4 sm:$0xff]   ;;  %v2187_v36 = vld [vmem:[#allocation5 + $0x98] ss:$12 sps:$4 sm:$0xff]   ;;  %v61_v42 = vsub.s32 1, %v2232_v39  ;;  %v58_v44 = vrot.slane %v53_v41, %v57_v40  ;;  %v65_v50 = vsub.s32 2, %v2232_v39 }
  0x1f   :  { %456 = vmatpush1.bf16.msra.mxu0 %v2089_v9  ;;  %vm1423_vm3 = vcmask 1041409   ;;  %vm1425_vm4 = vcmask 1042434   ;;  %vm1427_vm5 = vcmask 1043459   ;;  %vm1429_vm6 = vcmask 1044484   ;;  %s2017_s8 = smov [#allocation8]  }
  0x20   :  { %457 = vmatprep.subr.bf16.mxu0 %v2093_v10  ;;  %v62_v46 = vrot.slane %v53_v41, %v61_v42  ;;  %v2244_v52 = vrot.slane %v53_v41, %v65_v50  ;;  %vm1431_vm7 = vcmask 1045509   ;;  %vm1433_vm8 = vcmask 1046534   ;;  %s1488_s9 = sshll.u32 %s2017_s8, 4  ;;  %s1489_s9 = int_to_ptr.vmem [resolvable:$true] %s1488_s9 }
  0x21   :  { %1653 = vmatpush3.bf16.msra.mxu1 %v2125_v21  ;;  %vm1435_vm9 = vcmask 1047559   ;;  %s1985_s10 = scalar_lea.vmem %s1489_s9, 128  ;;  %p1990_p9 = scmp.lt.s32.totalorder %s1489_s9, %s1489_s9 }
  0x22   :  { %1513 = vmatmul.mubr.msk.bf16.gmra.mrb[4].mxu0 %vm98_vm1, %v1827_v12  ;;  %1654 = vmatprep.subr.bf16.mxu1 %v2604_v16  ;;  %p1986_p8 = scmp.ne.s32.totalorder %s1489_s9, %s1985_s10  ;;  %p1991_p10 = scmp.lt.s32.totalorder %s1985_s10, %s1985_s10 }
  0x23   :  { %458 = vmatpush1.bf16.msra.mxu0 %v2101_v13  ;;  %173 = vmatprep.mubr.bf16.mxu0 %v2602_v0 }
  0x24   :  { %459 = vmatprep.subr.bf16.mxu0 %v2107_v15  ;;  %1647 = vmatmul.mubr.msk.bf16.gmra.mrb[4].mxu1 %vm98_vm1, %v1842_v25  ;;  %p1992_p11 = por %p1991_p10, %p1990_p9 }
  0x25   :  { %1655 = vmatpush3.bf16.msra.mxu1 %v2136_v24  ;;  %1666 = vmatprep.mubr.msk.bf16.mxu1 %vm2016_vm2, %v2604_v16 }
  0x26   :  { %1656 = vmatprep.subr.bf16.mxu1 %v2604_v16  ;;  %p1993_p12 = pnand %p1992_p11, %p1986_p8 }
  0x27   :  { %460 = vmatpush1.bf16.msra.mxu0 %v2114_v18 }
  0x28   :  { %461 = vmatprep.subr.bf16.mxu0 %v2121_v20 }
  0x29   :  { %1657 = vmatpush3.bf16.msra.mxu1 %v2152_v28 }
  0x2a   :  { %1514 = vmatmul.mubr.msk.bf16.gmra.mrb[8].mxu0 %vm98_vm1, %v1834_v19  ;;  %1658 = vmatprep.subr.bf16.mxu1 %v2604_v16 }
  0x2b   :  { %462 = vmatpush1.bf16.msra.mxu0 %v2130_v22  ;;  %183 = vmatprep.mubr.bf16.mxu0 %v2602_v0 }
  0x2c   :  { %463 = vmatprep.subr.bf16.mxu0 %v2133_v23 }
  0x2d   :  { %1659 = vmatpush3.bf16.msra.mxu1 %v2164_v31 }
  0x2e   :  { %1660 = vmatprep.subr.bf16.mxu1 %v2604_v16 }
  0x2f   :  { %464 = vmatpush1.bf16.msra.mxu0 %v2144_v26 }
  0x30   :  { %465 = vmatprep.subr.bf16.mxu0 %v2148_v27 }
  0x31   :  { %1661 = vmatpush3.bf16.msra.mxu1 %v2179_v34 }
  0x32   :  { %1515 = vmatmul.mubr.msk.bf16.gmra.mrb[12].mxu0 %vm98_vm1, %v1842_v25  ;;  %1662 = vmatprep.subr.bf16.mxu1 %v2604_v16 }
  0x33   :  { %466 = vmatpush1.bf16.msra.mxu0 %v2158_v29  ;;  %485 = vmatprep.mubr.bf16.mxu0 %v2602_v0 }
  0x34   :  { %467 = vmatprep.subr.bf16.mxu0 %v2161_v30 }
  0x35   :  { %1663 = vmatpush3.bf16.msra.mxu1 %v2187_v36 }
  0x36   :  { %1664 = vmatprep.subr.bf16.mxu1 %v2604_v16 }
  0x37   :  { %468 = vmatpush1.bf16.msra.mxu0 %v2169_v32 }
  0x38   :  { %568 = vmatprep.subr.bf16.mxu0 %v2077_v5 }
  0x39   :  { %1665 = vmatpush3.bf16.msra.mxu1 %v2194_v37 }
  0x3a   :  { %486 = vmatmul.mubr.bf16.vlgmr.msra.gmra.mrb[16].mxu0 %v324_v35  ;;  %1670 = vmatprep.subr.bf16.mxu1 %v2604_v16 }
  0x3b   :  { %569 = vmatpush1.bf16.msra.mxu0 %v2082_v7  ;;  %600 = vmatprep.mubr.bf16.mxu0 %v2602_v0 }
  0x3c   :  { %570 = vmatprep.subr.bf16.mxu0 %v2085_v8  ;;  %1667 = vmatmul.mubr.bf16.vlgmr.msra.gmra.mrb[8].mxu1 %v324_v35 }
  0x3d   :  { %1671 = vmatpush3.bf16.msra.mxu1 %v2111_v17  ;;  %1686 = vmatprep.mubr.msk.bf16.mxu1 %vm2016_vm2, %v2604_v16 }
  0x3e   :  { %1672 = vmatprep.subr.bf16.mxu1 %v2604_v16 }
  0x3f   :  { %571 = vmatpush1.bf16.msra.mxu0 %v2089_v9 }
  0x40   :  { %572 = vmatprep.subr.bf16.mxu0 %v2093_v10 }
  0x41   :  { %1673 = vmatpush3.bf16.msra.mxu1 %v2125_v21 }
  0x42   :  { %1674 = vmatprep.subr.bf16.mxu1 %v2604_v16 }
  0x43   :  { %573 = vmatpush1.bf16.msra.mxu0 %v2101_v13 }
  0x44   :  { %574 = vmatprep.subr.bf16.mxu0 %v2107_v15 }
  0x45   :  { %1675 = vmatpush3.bf16.msra.mxu1 %v2136_v24 }
  0x46   :  { %1676 = vmatprep.subr.bf16.mxu1 %v2604_v16 }
  0x47   :  { %575 = vmatpush1.bf16.msra.mxu0 %v2114_v18 }
  0x48   :  { %576 = vmatprep.subr.bf16.mxu0 %v2121_v20 }
  0x49   :  { %1677 = vmatpush3.bf16.msra.mxu1 %v2152_v28 }
  0x4a   :  { %1678 = vmatprep.subr.bf16.mxu1 %v2604_v16 }
  0x4b   :  { %577 = vmatpush1.bf16.msra.mxu0 %v2130_v22 }
  0x4c   :  { %578 = vmatprep.subr.bf16.mxu0 %v2133_v23 }
  0x4d   :  { %1679 = vmatpush3.bf16.msra.mxu1 %v2164_v31 }
  0x4e   :  { %1680 = vmatprep.subr.bf16.mxu1 %v2604_v16 }
  0x4f   :  { %579 = vmatpush1.bf16.msra.mxu0 %v2144_v26 }
  0x50   :  { %580 = vmatprep.subr.bf16.mxu0 %v2148_v27 }
  0x51   :  { %1681 = vmatpush3.bf16.msra.mxu1 %v2179_v34 }
  0x52   :  { %1682 = vmatprep.subr.bf16.mxu1 %v2604_v16 }
  0x53   :  { %581 = vmatpush1.bf16.msra.mxu0 %v2158_v29 }
  0x54   :  { %582 = vmatprep.subr.bf16.mxu0 %v2161_v30 }
  0x55   :  { %1683 = vmatpush3.bf16.msra.mxu1 %v2187_v36 }
  0x56   :  { %1684 = vmatprep.subr.bf16.mxu1 %v2604_v16 }
  0x57   :  { %583 = vmatpush1.bf16.msra.mxu0 %v2169_v32 }
  0x58   :  { %680 = vmatprep.subr.bf16.mxu0 %v2077_v5 }
  0x59   :  { %1685 = vmatpush3.bf16.msra.mxu1 %v2194_v37 }
  0x5a   :  { %1690 = vmatprep.subr.bf16.mxu1 %v2604_v16 }
  0xed   :  { %v155_v43 = vpop.f32.mrb[0].mxu0 }
  0xee   :  { %v157_v45 = vpop.f32.mrb[1].mxu0 }
  0xef   :  { %v159_v47 = vpop.f32.mrb[2].mxu0  ;;  %v1644_v58 = vpop.f32.mrb[0].mxu1 }
  0xf0   :  { %v2239_v48 = vadd.f32 %v159_v47, %v58_v44  ;;  %v161_v49 = vpop.f32.mrb[3].mxu0  ;;  %v2253_v61 = vadd.f32 %v1644_v58, %v2244_v52  ;;  %v228_v62 = vpop.f32.mrb[1].mxu1 }
  0xf1   :  { %v2242_v51 = vadd.f32 %v161_v49, %v62_v46  ;;  %v1645_v1 = vpop.f32.mrb[2].mxu1 }
  0xf2   :  { %v2258_v2 = vadd.f32 %v1645_v1, %v2244_v52  ;;  %v231_v3 = vpop.f32.mrb[3].mxu1 }
  0xf3   :  { %v2261_v4 = vadd.f32 %v231_v3, %v2244_v52 }
  0xf5   :  { %v165_v53 = vpop.f32.mrb[4].mxu0 }
  0xf6   :  { %v2246_v54 = vadd.f32 %v165_v53, %v58_v44  ;;  %v167_v55 = vpop.f32.mrb[5].mxu0 }
  0xf7   :  { %v2248_v56 = vadd.f32 %v167_v55, %v62_v46  ;;  %v169_v57 = vpop.f32.mrb[6].mxu0  ;;  %v1648_v25 = vpop.f32.mrb[4].mxu1 }
  0xf8   :  { %v2250_v59 = vadd.f32 %v169_v57, %v58_v44  ;;  %v171_v60 = vpop.f32.mrb[7].mxu0  ;;  %v2270_v41 = vadd.f32 %v1648_v25, %v2244_v52  ;;  %v244_v42 = vpop.f32.mrb[5].mxu1 }
  0xf9   :  { %v2255_v63 = vadd.f32 %v171_v60, %v62_v46  ;;  %v2275_v49 = vadd.f32 %v244_v42, %v2244_v52  ;;  %v1649_v50 = vpop.f32.mrb[6].mxu1  ;;  %v158_v42 = vadd.f32 %v157_v45, %v62_v46 }
  0xfa   :  { %2608 = vst [vmem:[#allocation12_spill] sm:$0xff] %v2270_v41  ;;  %v2278_v53 = vadd.f32 %v1649_v50, %v2244_v52  ;;  %v247_v55 = vpop.f32.mrb[7].mxu1 }
  0xfb   :  { %v2281_v57 = vadd.f32 %v247_v55, %v2244_v52 }
  0xfc   :  { %2609 = vst [vmem:[#allocation13_spill] sm:$0xff] %v2278_v53 }
  0xfd   :  { %v175_v6 = vpop.f32.mrb[8].mxu0 }
  0xfe   :  { %v2263_v11 = vadd.f32 %v175_v6, %v58_v44  ;;  %v177_v12 = vpop.f32.mrb[9].mxu0 }
  0xff   :  { %v2265_v14 = vadd.f32 %v177_v12, %v62_v46  ;;  %v179_v19 = vpop.f32.mrb[10].mxu0 }
 0x100   :  { %v2267_v35 = vadd.f32 %v179_v19, %v58_v44  ;;  %v181_v40 = vpop.f32.mrb[11].mxu0 }
 0x101   :  { %v2272_v47 = vadd.f32 %v181_v40, %v62_v46  ;;  %v156_v40 = vadd.f32 %v155_v43, %v58_v44  ;;  %v2294_v43 = vld [vmem:[%s2598_s5] ss:$0 sm:$0xff] }
 0x105   :  { %v185_v58 = vpop.f32.mrb[12].mxu0 }
 0x106   :  { %v2283_v60 = vadd.f32 %v185_v58, %v58_v44  ;;  %v187_v1 = vpop.f32.mrb[13].mxu0 }
 0x107   :  { %v2285_v3 = vadd.f32 %v187_v1, %v62_v46  ;;  %v189_v6 = vpop.f32.mrb[14].mxu0 }
 0x108   :  { %2610 = vst [vmem:[#allocation14_spill] sm:$0xff] %v2283_v60  ;;  %v2287_v12 = vadd.f32 %v189_v6, %v58_v44  ;;  %v191_v19 = vpop.f32.mrb[15].mxu0 }
 0x109   :  { %2611 = vst [vmem:[#allocation15_spill] sm:$0xff] %v2285_v3  ;;  %v2289_v25 = vadd.f32 %v191_v19, %v62_v46 }
 0x10a   :  { %2612 = vst [vmem:[#allocation16_spill] sm:$0xff] %v2287_v12 }
 0x10d   :  { %v487_v50 = vpop.f32.mrb[16].mxu0 }
 0x10e   :  { %v534_v38 = vadd.f32 %v487_v50, %v156_v40  ;;  %v489_v0 = vpop.f32.mrb[17].mxu0  ;;  %v2302_v40 = vld [vmem:[%s2598_s5 + $0x1] ss:$0 sm:$0xff] }
 0x10f   :  { %v541_v16 = vadd.f32 %v489_v0, %v158_v42  ;;  %v491_v55 = vpop.f32.mrb[18].mxu0  ;;  %v528_v41 = vpop.f32.mrb[8].mxu1 }
 0x110   :  { %v1544_v39 = vmul.f32 -1.442695, %v534_v38  ;;  %v492_v53 = vpop.f32.mrb[19].mxu0  ;;  %v1668_v1 = vpop.f32.mrb[9].mxu1  ;;  %v552_v38 = vadd.f32 %v2294_v43, %v528_v41  ;;  %v2614_v41 = vmov 0  }
 0x111   :  { %v1545_v58 = vmul.f32 -1.442695, %v541_v16  ;;  %v531_v3 = vpop.f32.mrb[10].mxu1  ;;  %v229_v16 = vadd.f32 %v228_v62, %v2244_v52 }
 0x112   :  { %1857 = vpow2.f32 %v1544_v39  ;;  %v1669_v6 = vpop.f32.mrb[11].mxu1 }
 0x113   :  { %1859 = vpow2.f32 %v1545_v58 }
 0x11c   :  { %v1858_v12 = vpop.eup %1857 }
 0x11d   :  { %v538_v60 = vadd.f32 1.0, %v1858_v12  ;;  %v1860_v19 = vpop.eup %1859 }
 0x11e   :  { %v545_v0 = vadd.f32 1.0, %v1860_v19 }
 0x11f   :  { %1861 = vrcp.f32 %v538_v60 }
 0x120   :  { %1863 = vrcp.f32 %v545_v0 }
 0x129   :  { %v1862_v44 = vpop.eup %1861 }
 0x12a   :  { %v553_v39 = vmul.f32 %v1862_v44, %v552_v38  ;;  %v1864_v46 = vpop.eup %1863 }
 0x12b   :  { %v556_v53 = vsub.f32 1.0, %v1864_v46  ;;  %v558_v12 = vmul.f32 %v1864_v46, %v2175_v33  ;;  %v2613_v33 = vmov 0.0  }
 0x12c   :  { %v554_v45 = vadd.f32 %v553_v39, %v229_v16 }
 0x12e   :  { %1865 = vtanh.f32 %v554_v45 }
 0x138   :  { %v1866_v3 = vpop.eup %1865 }
 0x139   :  { %v557_v60 = vmul.f32 %v1866_v3, %v556_v53 }
 0x13b   :  { %v2304_v42 = vadd.f32 %v558_v12, %v557_v60 }
 0x13d   :  { %v1357_v52 = vmul.f32 %v2302_v40, %v2304_v42  ;;  %v567_v62 = vpack.c.bf16 %v2304_v42, %v2304_v42 }
 0x13f   :  { %1365 = vadd.xlane.f32.xlu0 %v1357_v52  ;;  %601 = vmatmul.mubr.bf16.vlgmr.msra.gmra.mrb[20].mxu0 %v567_v62 }
 0x140   :  { %1687 = vmatmul.mubr.bf16.vlgmr.msra.gmra.mrb[12].mxu1 %v567_v62  ;;  %681 = vmatpush1.bf16.msra.mxu0 %v2082_v7 }
 0x141   :  { %1691 = vmatpush3.bf16.msra.mxu1 %v2111_v17  ;;  %682 = vmatprep.subr.bf16.mxu0 %v2085_v8 }
 0x142   :  { %1692 = vmatprep.subr.bf16.mxu1 %v2613_v33  ;;  %712 = vmatprep.mubr.bf16.mxu0 %v2614_v41 }
 0x143   :  { %1706 = vmatprep.mubr.msk.bf16.mxu1 %vm2016_vm2, %v2613_v33 }
 0x144   :  { %683 = vmatpush1.bf16.msra.mxu0 %v2089_v9 }
 0x145   :  { %1693 = vmatpush3.bf16.msra.mxu1 %v2125_v21  ;;  %684 = vmatprep.subr.bf16.mxu0 %v2093_v10 }
 0x146   :  { %1694 = vmatprep.subr.bf16.mxu1 %v2613_v33 }
 0x148   :  { %685 = vmatpush1.bf16.msra.mxu0 %v2101_v13 }
 0x149   :  { %1695 = vmatpush3.bf16.msra.mxu1 %v2136_v24  ;;  %686 = vmatprep.subr.bf16.mxu0 %v2107_v15 }
 0x14a   :  { %1696 = vmatprep.subr.bf16.mxu1 %v2613_v33 }
 0x14c   :  { %687 = vmatpush1.bf16.msra.mxu0 %v2114_v18 }
 0x14d   :  { %1697 = vmatpush3.bf16.msra.mxu1 %v2152_v28  ;;  %688 = vmatprep.subr.bf16.mxu0 %v2121_v20 }
 0x14e   :  { %1698 = vmatprep.subr.bf16.mxu1 %v2613_v33 }
 0x150   :  { %689 = vmatpush1.bf16.msra.mxu0 %v2130_v22 }
 0x151   :  { %1699 = vmatpush3.bf16.msra.mxu1 %v2164_v31  ;;  %690 = vmatprep.subr.bf16.mxu0 %v2133_v23 }
 0x152   :  { %1700 = vmatprep.subr.bf16.mxu1 %v2613_v33 }
 0x154   :  { %691 = vmatpush1.bf16.msra.mxu0 %v2144_v26 }
 0x155   :  { %1701 = vmatpush3.bf16.msra.mxu1 %v2179_v34  ;;  %692 = vmatprep.subr.bf16.mxu0 %v2148_v27 }
 0x156   :  { %1702 = vmatprep.subr.bf16.mxu1 %v2613_v33 }
 0x158   :  { %693 = vmatpush1.bf16.msra.mxu0 %v2158_v29 }
 0x159   :  { %1703 = vmatpush3.bf16.msra.mxu1 %v2187_v36  ;;  %694 = vmatprep.subr.bf16.mxu0 %v2161_v30 }
 0x15a   :  { %1704 = vmatprep.subr.bf16.mxu1 %v2613_v33 }
 0x15c   :  { %695 = vmatpush1.bf16.msra.mxu0 %v2169_v32 }
 0x15d   :  { %1705 = vmatpush3.bf16.msra.mxu1 %v2194_v37  ;;  %792 = vmatprep.subr.bf16.mxu0 %v2077_v5 }
 0x15e   :  { %1710 = vmatprep.subr.bf16.mxu1 %v2613_v33 }
 0x212   :  { %v602_v50 = vpop.f32.mrb[20].mxu0 }
 0x213   :  { %v649_v55 = vadd.f32 %v602_v50, %v2239_v48  ;;  %v643_v58 = vpop.f32.mrb[12].mxu1  ;;  %v604_v1 = vpop.f32.mrb[21].mxu0 }
 0x214   :  { %v656_v6 = vadd.f32 %v604_v1, %v2242_v51  ;;  %v1688_v19 = vpop.f32.mrb[13].mxu1  ;;  %v606_v0 = vpop.f32.mrb[22].mxu0  ;;  %v663_v48 = vadd.f32 %v2294_v43, %v643_v58 }
 0x215   :  { %v1547_v38 = vmul.f32 -1.442695, %v649_v55  ;;  %v646_v44 = vpop.f32.mrb[14].mxu1  ;;  %v607_v16 = vpop.f32.mrb[23].mxu0 }
 0x216   :  { %v1689_v39 = vpop.f32.mrb[15].mxu1  ;;  %v1548_v45 = vmul.f32 -1.442695, %v656_v6 }
 0x217   :  { %1867 = vpow2.f32 %v1547_v38 }
 0x218   :  { %1869 = vpow2.f32 %v1548_v45 }
 0x221   :  { %v1868_v46 = vpop.eup %1867 }
 0x222   :  { %v653_v53 = vadd.f32 1.0, %v1868_v46  ;;  %v1870_v3 = vpop.eup %1869 }
 0x223   :  { %v660_v60 = vadd.f32 1.0, %v1870_v3 }
 0x224   :  { %1871 = vrcp.f32 %v653_v53 }
 0x225   :  { %1873 = vrcp.f32 %v660_v60 }
 0x22e   :  { %v1872_v12 = vpop.eup %1871 }
 0x22f   :  { %v664_v52 = vmul.f32 %v1872_v12, %v663_v48  ;;  %v1874_v62 = vpop.eup %1873 }
 0x230   :  { %v667_v50 = vsub.f32 1.0, %v1874_v62  ;;  %v669_v6 = vmul.f32 %v1874_v62, %v2304_v42 }
 0x231   :  { %v665_v51 = vadd.f32 %v664_v52, %v2261_v4 }
 0x233   :  { %1875 = vtanh.f32 %v665_v51 }
 0x23d   :  { %v1876_v55 = vpop.eup %1875 }
 0x23e   :  { %v668_v1 = vmul.f32 %v1876_v55, %v667_v50 }
 0x240   :  { %v2350_v19 = vadd.f32 %v669_v6, %v668_v1 }
 0x242   :  { %v1358_v0 = vmul.f32 %v2302_v40, %v2350_v19  ;;  %v679_v58 = vpack.c.bf16 %v2350_v19, %v2350_v19 }
 0x244   :  { %1367 = vadd.xlane.f32.xlu0 %v1358_v0  ;;  %713 = vmatmul.mubr.bf16.vlgmr.msra.gmra.mrb[24].mxu0 %v679_v58 }
 0x245   :  { %1707 = vmatmul.mubr.bf16.vlgmr.msra.gmra.mrb[16].mxu1 %v679_v58  ;;  %793 = vmatpush1.bf16.msra.mxu0 %v2082_v7 }
 0x246   :  { %1711 = vmatpush3.bf16.msra.mxu1 %v2111_v17  ;;  %794 = vmatprep.subr.bf16.mxu0 %v2085_v8 }
 0x247   :  { %1712 = vmatprep.subr.bf16.mxu1 %v2613_v33  ;;  %824 = vmatprep.mubr.bf16.mxu0 %v2614_v41 }
 0x248   :  { %1726 = vmatprep.mubr.msk.bf16.mxu1 %vm2016_vm2, %v2613_v33 }
 0x249   :  { %795 = vmatpush1.bf16.msra.mxu0 %v2089_v9 }
 0x24a   :  { %1713 = vmatpush3.bf16.msra.mxu1 %v2125_v21  ;;  %796 = vmatprep.subr.bf16.mxu0 %v2093_v10 }
 0x24b   :  { %1714 = vmatprep.subr.bf16.mxu1 %v2613_v33 }
 0x24d   :  { %797 = vmatpush1.bf16.msra.mxu0 %v2101_v13 }
 0x24e   :  { %1715 = vmatpush3.bf16.msra.mxu1 %v2136_v24  ;;  %798 = vmatprep.subr.bf16.mxu0 %v2107_v15 }
 0x24f   :  { %1716 = vmatprep.subr.bf16.mxu1 %v2613_v33 }
 0x251   :  { %799 = vmatpush1.bf16.msra.mxu0 %v2114_v18 }
 0x252   :  { %1717 = vmatpush3.bf16.msra.mxu1 %v2152_v28  ;;  %800 = vmatprep.subr.bf16.mxu0 %v2121_v20 }
 0x253   :  { %1718 = vmatprep.subr.bf16.mxu1 %v2613_v33 }
 0x255   :  { %801 = vmatpush1.bf16.msra.mxu0 %v2130_v22 }
 0x256   :  { %1719 = vmatpush3.bf16.msra.mxu1 %v2164_v31  ;;  %802 = vmatprep.subr.bf16.mxu0 %v2133_v23 }
 0x257   :  { %1720 = vmatprep.subr.bf16.mxu1 %v2613_v33 }
 0x259   :  { %803 = vmatpush1.bf16.msra.mxu0 %v2144_v26 }
 0x25a   :  { %1721 = vmatpush3.bf16.msra.mxu1 %v2179_v34  ;;  %804 = vmatprep.subr.bf16.mxu0 %v2148_v27 }
 0x25b   :  { %1722 = vmatprep.subr.bf16.mxu1 %v2613_v33 }
 0x25d   :  { %805 = vmatpush1.bf16.msra.mxu0 %v2158_v29 }
 0x25e   :  { %1723 = vmatpush3.bf16.msra.mxu1 %v2187_v36  ;;  %806 = vmatprep.subr.bf16.mxu0 %v2161_v30 }
 0x25f   :  { %1724 = vmatprep.subr.bf16.mxu1 %v2613_v33 }
 0x261   :  { %807 = vmatpush1.bf16.msra.mxu0 %v2169_v32 }
 0x262   :  { %1725 = vmatpush3.bf16.msra.mxu1 %v2194_v37  ;;  %904 = vmatprep.subr.bf16.mxu0 %v2077_v5 }
 0x263   :  { %1730 = vmatprep.subr.bf16.mxu1 %v2613_v33 }
 0x317   :  { %v714_v4 = vpop.f32.mrb[24].mxu0 }
 0x318   :  { %v761_v42 = vadd.f32 %v714_v4, %v2246_v54  ;;  %v755_v38 = vpop.f32.mrb[16].mxu1  ;;  %v716_v44 = vpop.f32.mrb[25].mxu0 }
 0x319   :  { %v768_v16 = vadd.f32 %v716_v44, %v2248_v56  ;;  %v1708_v39 = vpop.f32.mrb[17].mxu1  ;;  %v718_v45 = vpop.f32.mrb[26].mxu0  ;;  %v775_v54 = vadd.f32 %v2294_v43, %v755_v38 }
 0x31a   :  { %v1549_v46 = vmul.f32 -1.442695, %v761_v42  ;;  %v758_v53 = vpop.f32.mrb[18].mxu1  ;;  %v719_v3 = vpop.f32.mrb[27].mxu0 }
 0x31b   :  { %v1709_v60 = vpop.f32.mrb[19].mxu1  ;;  %v1550_v48 = vmul.f32 -1.442695, %v768_v16 }
 0x31c   :  { %1877 = vpow2.f32 %v1549_v46 }
 0x31d   :  { %1879 = vpow2.f32 %v1550_v48 }
 0x326   :  { %v1878_v12 = vpop.eup %1877 }
 0x327   :  { %v765_v52 = vadd.f32 1.0, %v1878_v12  ;;  %v1880_v51 = vpop.eup %1879 }
 0x328   :  { %v772_v62 = vadd.f32 1.0, %v1880_v51 }
 0x329   :  { %1881 = vrcp.f32 %v765_v52 }
 0x32a   :  { %1883 = vrcp.f32 %v772_v62 }
 0x333   :  { %v1882_v50 = vpop.eup %1881 }
 0x334   :  { %v776_v55 = vmul.f32 %v1882_v50, %v775_v54  ;;  %v1884_v1 = vpop.eup %1883 }
 0x335   :  { %v779_v6 = vsub.f32 1.0, %v1884_v1  ;;  %v781_v4 = vmul.f32 %v1884_v1, %v2350_v19 }
 0x336   :  { %v777_v56 = vadd.f32 %v776_v55, %v2253_v61 }
 0x338   :  { %1885 = vtanh.f32 %v777_v56 }
 0x342   :  { %v1886_v0 = vpop.eup %1885 }
 0x343   :  { %v780_v58 = vmul.f32 %v1886_v0, %v779_v6 }
 0x345   :  { %v2396_v42 = vadd.f32 %v781_v4, %v780_v58 }
 0x347   :  { %v1359_v44 = vmul.f32 %v2302_v40, %v2396_v42  ;;  %v791_v38 = vpack.c.bf16 %v2396_v42, %v2396_v42 }
 0x349   :  { %1369 = vadd.xlane.f32.xlu1 %v1359_v44  ;;  %825 = vmatmul.mubr.bf16.vlgmr.msra.gmra.mrb[28].mxu0 %v791_v38 }
 0x34a   :  { %1727 = vmatmul.mubr.bf16.vlgmr.msra.gmra.mrb[20].mxu1 %v791_v38  ;;  %905 = vmatpush1.bf16.msra.mxu0 %v2082_v7 }
 0x34b   :  { %1731 = vmatpush3.bf16.msra.mxu1 %v2111_v17  ;;  %906 = vmatprep.subr.bf16.mxu0 %v2085_v8 }
 0x34c   :  { %1732 = vmatprep.subr.bf16.mxu1 %v2613_v33  ;;  %936 = vmatprep.mubr.bf16.mxu0 %v2614_v41 }
 0x34d   :  { %1746 = vmatprep.mubr.msk.bf16.mxu1 %vm2016_vm2, %v2613_v33 }
 0x34e   :  { %907 = vmatpush1.bf16.msra.mxu0 %v2089_v9 }
 0x34f   :  { %1733 = vmatpush3.bf16.msra.mxu1 %v2125_v21  ;;  %908 = vmatprep.subr.bf16.mxu0 %v2093_v10 }
 0x350   :  { %1734 = vmatprep.subr.bf16.mxu1 %v2613_v33 }
 0x352   :  { %909 = vmatpush1.bf16.msra.mxu0 %v2101_v13 }
 0x353   :  { %1735 = vmatpush3.bf16.msra.mxu1 %v2136_v24  ;;  %910 = vmatprep.subr.bf16.mxu0 %v2107_v15 }
 0x354   :  { %1736 = vmatprep.subr.bf16.mxu1 %v2613_v33 }
 0x356   :  { %911 = vmatpush1.bf16.msra.mxu0 %v2114_v18 }
 0x357   :  { %1737 = vmatpush3.bf16.msra.mxu1 %v2152_v28  ;;  %912 = vmatprep.subr.bf16.mxu0 %v2121_v20 }
 0x358   :  { %1738 = vmatprep.subr.bf16.mxu1 %v2613_v33 }
 0x35a   :  { %913 = vmatpush1.bf16.msra.mxu0 %v2130_v22 }
 0x35b   :  { %1739 = vmatpush3.bf16.msra.mxu1 %v2164_v31  ;;  %914 = vmatprep.subr.bf16.mxu0 %v2133_v23 }
 0x35c   :  { %1740 = vmatprep.subr.bf16.mxu1 %v2613_v33 }
 0x35e   :  { %915 = vmatpush1.bf16.msra.mxu0 %v2144_v26 }
 0x35f   :  { %1741 = vmatpush3.bf16.msra.mxu1 %v2179_v34  ;;  %916 = vmatprep.subr.bf16.mxu0 %v2148_v27 }
 0x360   :  { %1742 = vmatprep.subr.bf16.mxu1 %v2613_v33 }
 0x362   :  { %917 = vmatpush1.bf16.msra.mxu0 %v2158_v29 }
 0x363   :  { %1743 = vmatpush3.bf16.msra.mxu1 %v2187_v36  ;;  %918 = vmatprep.subr.bf16.mxu0 %v2161_v30 }
 0x364   :  { %1744 = vmatprep.subr.bf16.mxu1 %v2613_v33 }
 0x366   :  { %919 = vmatpush1.bf16.msra.mxu0 %v2169_v32 }
 0x367   :  { %1745 = vmatpush3.bf16.msra.mxu1 %v2194_v37  ;;  %1016 = vmatprep.subr.bf16.mxu0 %v2077_v5 }
 0x368   :  { %1750 = vmatprep.subr.bf16.mxu1 %v2613_v33 }
 0x41c   :  { %v826_v61 = vpop.f32.mrb[28].mxu0 }
 0x41d   :  { %v873_v19 = vadd.f32 %v826_v61, %v2250_v59  ;;  %v867_v16 = vpop.f32.mrb[20].mxu1  ;;  %v828_v39 = vpop.f32.mrb[29].mxu0 }
 0x41e   :  { %v880_v45 = vadd.f32 %v828_v39, %v2255_v63  ;;  %v1728_v46 = vpop.f32.mrb[21].mxu1  ;;  %v830_v53 = vpop.f32.mrb[30].mxu0  ;;  %v887_v59 = vadd.f32 %v2294_v43, %v867_v16 }
 0x41f   :  { %v1551_v3 = vmul.f32 -1.442695, %v873_v19  ;;  %v870_v60 = vpop.f32.mrb[22].mxu1  ;;  %v831_v48 = vpop.f32.mrb[31].mxu0 }
 0x420   :  { %v1729_v12 = vpop.f32.mrb[23].mxu1  ;;  %v1552_v52 = vmul.f32 -1.442695, %v880_v45 }
 0x421   :  { %1887 = vpow2.f32 %v1551_v3 }
 0x422   :  { %1889 = vpow2.f32 %v1552_v52 }
 0x42b   :  { %v1888_v51 = vpop.eup %1887 }
 0x42c   :  { %v877_v62 = vadd.f32 1.0, %v1888_v51  ;;  %v1890_v54 = vpop.eup %1889 }
 0x42d   :  { %v884_v50 = vadd.f32 1.0, %v1890_v54 }
 0x42e   :  { %1891 = vrcp.f32 %v877_v62 }
 0x42f   :  { %1893 = vrcp.f32 %v884_v50 }
 0x438   :  { %v1892_v55 = vpop.eup %1891 }
 0x439   :  { %v888_v56 = vmul.f32 %v1892_v55, %v887_v59  ;;  %v1894_v1 = vpop.eup %1893 }
 0x43a   :  { %v891_v6 = vsub.f32 1.0, %v1894_v1  ;;  %v893_v4 = vmul.f32 %v1894_v1, %v2396_v42  ;;  %v2505_v1 = vld [vmem:[#allocation5 + $0x18] ss:$12 sps:$4 sm:$0xff]  }
 0x43b   :  { %v889_v63 = vadd.f32 %v888_v56, %v2258_v2 }
 0x43d   :  { %1895 = vtanh.f32 %v889_v63  ;;  %v2494_v63 = vld [vmem:[#allocation5] ss:$12 sps:$4 sm:$0xff]  }
 0x447   :  { %v1896_v0 = vpop.eup %1895 }
 0x448   :  { %v892_v58 = vmul.f32 %v1896_v0, %v891_v6  ;;  %v2509_v6 = vld [vmem:[#allocation5 + $0x34] ss:$12 sps:$4 sm:$0xff]  }
 0x44a   :  { %v2442_v44 = vadd.f32 %v893_v4, %v892_v58 }
 0x44c   :  { %v1360_v38 = vmul.f32 %v2302_v40, %v2442_v44  ;;  %v903_v61 = vpack.c.bf16 %v2442_v44, %v2442_v44 }
 0x44e   :  { %1371 = vadd.xlane.f32.xlu1 %v1360_v38  ;;  %937 = vmatmul.mubr.bf16.vlgmr.msra.gmra.mrb[32].mxu0 %v903_v61 }
 0x44f   :  { %1747 = vmatmul.mubr.bf16.vlgmr.msra.gmra.mrb[24].mxu1 %v903_v61  ;;  %1017 = vmatpush1.bf16.msra.mxu0 %v2082_v7 }
 0x450   :  { %1751 = vmatpush3.bf16.msra.mxu1 %v2111_v17  ;;  %1018 = vmatprep.subr.bf16.mxu0 %v2085_v8 }
 0x451   :  { %1752 = vmatprep.subr.bf16.mxu1 %v2613_v33  ;;  %1048 = vmatprep.mubr.bf16.mxu0 %v2614_v41 }
 0x452   :  { %1766 = vmatprep.mubr.msk.bf16.mxu1 %vm2016_vm2, %v2613_v33 }
 0x453   :  { %1019 = vmatpush1.bf16.msra.mxu0 %v2089_v9 }
 0x454   :  { %1753 = vmatpush3.bf16.msra.mxu1 %v2125_v21  ;;  %1020 = vmatprep.subr.bf16.mxu0 %v2093_v10 }
 0x455   :  { %1754 = vmatprep.subr.bf16.mxu1 %v2613_v33 }
 0x457   :  { %1021 = vmatpush1.bf16.msra.mxu0 %v2101_v13 }
 0x458   :  { %1755 = vmatpush3.bf16.msra.mxu1 %v2136_v24  ;;  %1022 = vmatprep.subr.bf16.mxu0 %v2107_v15 }
 0x459   :  { %1756 = vmatprep.subr.bf16.mxu1 %v2613_v33 }
 0x45b   :  { %1023 = vmatpush1.bf16.msra.mxu0 %v2114_v18 }
 0x45c   :  { %1757 = vmatpush3.bf16.msra.mxu1 %v2152_v28  ;;  %1024 = vmatprep.subr.bf16.mxu0 %v2121_v20 }
 0x45d   :  { %1758 = vmatprep.subr.bf16.mxu1 %v2613_v33 }
 0x45f   :  { %1025 = vmatpush1.bf16.msra.mxu0 %v2130_v22 }
 0x460   :  { %1759 = vmatpush3.bf16.msra.mxu1 %v2164_v31  ;;  %1026 = vmatprep.subr.bf16.mxu0 %v2133_v23 }
 0x461   :  { %1760 = vmatprep.subr.bf16.mxu1 %v2613_v33 }
 0x463   :  { %1027 = vmatpush1.bf16.msra.mxu0 %v2144_v26 }
 0x464   :  { %1761 = vmatpush3.bf16.msra.mxu1 %v2179_v34  ;;  %1028 = vmatprep.subr.bf16.mxu0 %v2148_v27 }
 0x465   :  { %1762 = vmatprep.subr.bf16.mxu1 %v2613_v33 }
 0x467   :  { %1029 = vmatpush1.bf16.msra.mxu0 %v2158_v29 }
 0x468   :  { %1763 = vmatpush3.bf16.msra.mxu1 %v2187_v36  ;;  %1030 = vmatprep.subr.bf16.mxu0 %v2161_v30 }
 0x469   :  { %1764 = vmatprep.subr.bf16.mxu1 %v2613_v33 }
 0x46b   :  { %1031 = vmatpush1.bf16.msra.mxu0 %v2169_v32 }
 0x46c   :  { %1765 = vmatpush3.bf16.msra.mxu1 %v2194_v37  ;;  %1128 = vmatprep.subr.bf16.mxu0 %v2077_v5 }
 0x46d   :  { %1770 = vmatprep.subr.bf16.mxu1 %v2613_v33 }
 0x521   :  { %v938_v7 = vpop.f32.mrb[32].mxu0 }
 0x522   :  { %v985_v8 = vadd.f32 %v938_v7, %v2263_v11  ;;  %v979_v9 = vpop.f32.mrb[24].mxu1  ;;  %v940_v10 = vpop.f32.mrb[33].mxu0 }
 0x523   :  { %v992_v13 = vadd.f32 %v940_v10, %v2265_v14  ;;  %v1748_v2 = vpop.f32.mrb[25].mxu1  ;;  %v942_v42 = vpop.f32.mrb[34].mxu0  ;;  %v999_v11 = vadd.f32 %v2294_v43, %v979_v9 }
 0x524   :  { %v1553_v19 = vmul.f32 -1.442695, %v985_v8  ;;  %v982_v16 = vpop.f32.mrb[26].mxu1  ;;  %v943_v39 = vpop.f32.mrb[35].mxu0  ;;  %v1947_v2 = vld [vmem:[#allocation5 + $0x38] ss:$12 sps:$4 sm:$0xff]  }
 0x525   :  { %v1749_v45 = vpop.f32.mrb[27].mxu1  ;;  %v1554_v46 = vmul.f32 -1.442695, %v992_v13  ;;  %v1946_v13 = vld [vmem:[#allocation5 + $0x20] ss:$12 sps:$4 sm:$0xff]  }
 0x526   :  { %1897 = vpow2.f32 %v1553_v19  ;;  %v1948_v42 = vld [vmem:[#allocation5 + $0x4c] ss:$12 sps:$4 sm:$0xff]   ;;  %v1950_v19 = vld [vmem:[#allocation5 + $0x50] ss:$12 sps:$4 sm:$0xff]   ;;  %v1953_v45 = vld [vmem:[#allocation5 + $0x68] ss:$12 sps:$4 sm:$0xff]  }
 0x527   :  { %1899 = vpow2.f32 %v1554_v46  ;;  %v1951_v16 = vld [vmem:[#allocation5 + $0x64] ss:$12 sps:$4 sm:$0xff]   ;;  %v1952_v39 = vld [vmem:[#allocation5 + $0x60] ss:$12 sps:$4 sm:$0xff]   ;;  %v1954_v46 = vld [vmem:[#allocation5 + $0x7c] ss:$12 sps:$4 sm:$0xff]  }
 0x530   :  { %v1898_v53 = vpop.eup %1897 }
 0x531   :  { %v989_v5 = vadd.f32 1.0, %v1898_v53  ;;  %v1900_v3 = vpop.eup %1899  ;;  %v1955_v53 = vld [vmem:[#allocation5 + $0x78] ss:$12 sps:$4 sm:$0xff]  }
 0x532   :  { %v996_v60 = vadd.f32 1.0, %v1900_v3  ;;  %v1957_v3 = vld [vmem:[#allocation5 + $0x94] ss:$12 sps:$4 sm:$0xff]  }
 0x533   :  { %1901 = vrcp.f32 %v989_v5  ;;  %v1956_v5 = vld [vmem:[#allocation5 + $0x80] ss:$12 sps:$4 sm:$0xff]  }
 0x534   :  { %1903 = vrcp.f32 %v996_v60  ;;  %v1958_v60 = vld [vmem:[#allocation5 + $0x90] ss:$12 sps:$4 sm:$0xff]  }
 0x53d   :  { %v1902_v48 = vpop.eup %1901 }
 0x53e   :  { %v1000_v12 = vmul.f32 %v1902_v48, %v999_v11  ;;  %v1904_v52 = vpop.eup %1903  ;;  %v1959_v11 = vld [vmem:[#allocation5 + $0x98] ss:$12 sps:$4 sm:$0xff]  }
 0x53f   :  { %v1003_v51 = vsub.f32 1.0, %v1904_v52  ;;  %v1005_v50 = vmul.f32 %v1904_v52, %v2442_v44  ;;  %v1960_v48 = vld [vmem:[#allocation5 + $0xac] ss:$12 sps:$4 sm:$0xff]  }
 0x540   :  { %v1001_v14 = vadd.f32 %v1000_v12, %v2275_v49  ;;  %v2498_v49 = vld [vmem:[#allocation5 + $0x1c] ss:$12 sps:$4 sm:$0xff]  }
 0x541   :  { %v1961_v12 = vld [vmem:[#allocation5 + $0xa8] ss:$12 sps:$4 sm:$0xff]  }
 0x542   :  { %1905 = vtanh.f32 %v1001_v14  ;;  %v1962_v14 = vld [vmem:[#allocation5 + $0xb0] ss:$12 sps:$4 sm:$0xff]  }
 0x54c   :  { %v1906_v62 = vpop.eup %1905 }
 0x54d   :  { %v1004_v54 = vmul.f32 %v1906_v62, %v1003_v51  ;;  %v2615_v51 = vld [vmem:[#allocation14_spill] sm:$0xff] }
 0x54f   :  { %v2488_v59 = vadd.f32 %v1005_v50, %v1004_v54 }
 0x551   :  { %v1361_v55 = vmul.f32 %v2302_v40, %v2488_v59  ;;  %v1015_v56 = vpack.c.bf16 %v2488_v59, %v2488_v59 }
 0x553   :  { %1373 = vadd.xlane.f32.xlu0 %v1361_v55  ;;  %1049 = vmatmul.mubr.bf16.vlgmr.msra.gmra.mrb[36].mxu0 %v1015_v56 }
 0x554   :  { %1767 = vmatmul.mubr.bf16.vlgmr.msra.gmra.mrb[28].mxu1 %v1015_v56  ;;  %1129 = vmatpush1.bf16.msra.mxu0 %v2494_v63 }
 0x555   :  { %1771 = vmatpush3.bf16.msra.mxu1 %v2111_v17  ;;  %1130 = vmatprep.subr.bf16.mxu0 %v2498_v49  ;;  %v2513_v17 = vld [vmem:[#allocation5 + $0x30] ss:$12 sps:$4 sm:$0xff]  }
 0x556   :  { %1772 = vmatprep.subr.bf16.mxu1 %v2613_v33  ;;  %1160 = vmatprep.mubr.bf16.mxu0 %v2614_v41 }
 0x557   :  { %1786 = vmatprep.mubr.msk.bf16.mxu1 %vm2016_vm2, %v2613_v33 }
 0x558   :  { %1131 = vmatpush1.bf16.msra.mxu0 %v2505_v1 }
 0x559   :  { %1773 = vmatpush3.bf16.msra.mxu1 %v2125_v21  ;;  %1132 = vmatprep.subr.bf16.mxu0 %v2509_v6 }
 0x55a   :  { %1774 = vmatprep.subr.bf16.mxu1 %v2613_v33 }
 0x55c   :  { %1133 = vmatpush1.bf16.msra.mxu0 %v2513_v17 }
 0x55d   :  { %1775 = vmatpush3.bf16.msra.mxu1 %v2136_v24  ;;  %1134 = vmatprep.subr.bf16.mxu0 %v2107_v15  ;;  %v1944_v15 = vld [vmem:[#allocation5 + $0x4] ss:$12 sps:$4 sm:$0xff]  }
 0x55e   :  { %1776 = vmatprep.subr.bf16.mxu1 %v2613_v33 }
 0x560   :  { %1135 = vmatpush1.bf16.msra.mxu0 %v2114_v18 }
 0x561   :  { %1777 = vmatpush3.bf16.msra.mxu1 %v2152_v28  ;;  %1136 = vmatprep.subr.bf16.mxu0 %v2121_v20 }
 0x562   :  { %1778 = vmatprep.subr.bf16.mxu1 %v2613_v33 }
 0x564   :  { %1137 = vmatpush1.bf16.msra.mxu0 %v2130_v22 }
 0x565   :  { %1779 = vmatpush3.bf16.msra.mxu1 %v2164_v31  ;;  %1138 = vmatprep.subr.bf16.mxu0 %v2133_v23 }
 0x566   :  { %1780 = vmatprep.subr.bf16.mxu1 %v2613_v33 }
 0x568   :  { %1139 = vmatpush1.bf16.msra.mxu0 %v2144_v26 }
 0x569   :  { %1781 = vmatpush3.bf16.msra.mxu1 %v2179_v34  ;;  %1140 = vmatprep.subr.bf16.mxu0 %v2148_v27 }
 0x56a   :  { %1782 = vmatprep.subr.bf16.mxu1 %v2613_v33 }
 0x56c   :  { %1141 = vmatpush1.bf16.msra.mxu0 %v2158_v29 }
 0x56d   :  { %1783 = vmatpush3.bf16.msra.mxu1 %v2187_v36  ;;  %1142 = vmatprep.subr.bf16.mxu0 %v2161_v30 }
 0x56e   :  { %1784 = vmatprep.subr.bf16.mxu1 %v2613_v33 }
 0x570   :  { %1143 = vmatpush1.bf16.msra.mxu0 %v2169_v32 }
 0x571   :  { %1785 = vmatpush3.bf16.msra.mxu1 %v2194_v37  ;;  %1240 = vmatprep.subr.bf16.mxu0 %v1944_v15 }
 0x572   :  { %1790 = vmatprep.subr.bf16.mxu1 %v2613_v33 }
 0x626   :  { %v1050_v18 = vpop.f32.mrb[36].mxu0 }
 0x627   :  { %v1097_v20 = vadd.f32 %v1050_v18, %v2267_v35  ;;  %v1091_v21 = vpop.f32.mrb[28].mxu1  ;;  %v1052_v22 = vpop.f32.mrb[37].mxu0 }
 0x628   :  { %v1104_v23 = vadd.f32 %v1052_v22, %v2272_v47  ;;  %v1768_v24 = vpop.f32.mrb[29].mxu1  ;;  %v1054_v26 = vpop.f32.mrb[38].mxu0  ;;  %v1111_v35 = vadd.f32 %v2294_v43, %v1091_v21 }
 0x629   :  { %v1555_v27 = vmul.f32 -1.442695, %v1097_v20  ;;  %v1094_v28 = vpop.f32.mrb[30].mxu1  ;;  %v1055_v29 = vpop.f32.mrb[39].mxu0  ;;  %v2617_v26 = vld [vmem:[#allocation12_spill] sm:$0xff] }
 0x62a   :  { %v1769_v30 = vpop.f32.mrb[31].mxu1  ;;  %v1556_v31 = vmul.f32 -1.442695, %v1104_v23 }
 0x62b   :  { %1907 = vpow2.f32 %v1555_v27 }
 0x62c   :  { %1909 = vpow2.f32 %v1556_v31 }
 0x635   :  { %v1908_v32 = vpop.eup %1907 }
 0x636   :  { %v1101_v34 = vadd.f32 1.0, %v1908_v32  ;;  %v1910_v36 = vpop.eup %1909 }
 0x637   :  { %v1108_v37 = vadd.f32 1.0, %v1910_v36 }
 0x638   :  { %1911 = vrcp.f32 %v1101_v34 }
 0x639   :  { %1913 = vrcp.f32 %v1108_v37 }
 0x642   :  { %v1912_v0 = vpop.eup %1911 }
 0x643   :  { %v1112_v58 = vmul.f32 %v1912_v0, %v1111_v35  ;;  %v1914_v4 = vpop.eup %1913  ;;  %v2618_v0 = vld [vmem:[#allocation16_spill] sm:$0xff] }
 0x644   :  { %v1115_v44 = vsub.f32 1.0, %v1914_v4  ;;  %v1117_v7 = vmul.f32 %v1914_v4, %v2488_v59  ;;  %v2616_v59 = vld [vmem:[#allocation15_spill] sm:$0xff] }
 0x645   :  { %v1113_v47 = vadd.f32 %v1112_v58, %v2281_v57  ;;  %v1945_v57 = vld [vmem:[#allocation5 + $0x8] ss:$12 sps:$4 sm:$0xff]  }
 0x647   :  { %1915 = vtanh.f32 %v1113_v47 }
 0x651   :  { %v1916_v38 = vpop.eup %1915 }
 0x652   :  { %v1116_v61 = vmul.f32 %v1916_v38, %v1115_v44 }
 0x654   :  { %v2543_v8 = vadd.f32 %v1117_v7, %v1116_v61 }
 0x656   :  { %v1362_v9 = vmul.f32 %v2302_v40, %v2543_v8  ;;  %v1127_v10 = vpack.c.bf16 %v2543_v8, %v2543_v8 }
 0x658   :  { %1375 = vadd.xlane.f32.xlu1 %v1362_v9  ;;  %1161 = vmatmul.mubr.bf16.vlgmr.msra.gmra.mrb[40].mxu0 %v1127_v10 }
 0x659   :  { %1787 = vmatmul.mubr.bf16.vlgmr.msra.gmra.mrb[32].mxu1 %v1127_v10  ;;  %1241 = vmatpush1.bf16.msra.mxu0 %v2494_v63 }
 0x65a   :  { %1791 = vmatpush3.bf16.msra.mxu1 %v1945_v57  ;;  %1242 = vmatprep.subr.bf16.mxu0 %v2498_v49 }
 0x65b   :  { %1792 = vmatprep.subr.bf16.mxu1 %v2613_v33  ;;  %1272 = vmatprep.mubr.bf16.mxu0 %v2614_v41  ;;  %v1949_v41 = vld [vmem:[#allocation5 + $0x48] ss:$12 sps:$4 sm:$0xff]  }
 0x65c   :  { %1806 = vmatprep.mubr.msk.bf16.mxu1 %vm2016_vm2, %v2613_v33 }
 0x65d   :  { %1243 = vmatpush1.bf16.msra.mxu0 %v2505_v1 }
 0x65e   :  { %1793 = vmatpush3.bf16.msra.mxu1 %v1946_v13  ;;  %1244 = vmatprep.subr.bf16.mxu0 %v2509_v6 }
 0x65f   :  { %1794 = vmatprep.subr.bf16.mxu1 %v2613_v33 }
 0x661   :  { %1245 = vmatpush1.bf16.msra.mxu0 %v2513_v17 }
 0x662   :  { %1795 = vmatpush3.bf16.msra.mxu1 %v1947_v2  ;;  %1246 = vmatprep.subr.bf16.mxu0 %v1948_v42 }
 0x663   :  { %1796 = vmatprep.subr.bf16.mxu1 %v2613_v33 }
 0x665   :  { %1247 = vmatpush1.bf16.msra.mxu0 %v1949_v41 }
 0x666   :  { %1797 = vmatpush3.bf16.msra.mxu1 %v1950_v19  ;;  %1248 = vmatprep.subr.bf16.mxu0 %v1951_v16 }
 0x667   :  { %1798 = vmatprep.subr.bf16.mxu1 %v2613_v33 }
 0x669   :  { %1249 = vmatpush1.bf16.msra.mxu0 %v1952_v39 }
 0x66a   :  { %1799 = vmatpush3.bf16.msra.mxu1 %v1953_v45  ;;  %1250 = vmatprep.subr.bf16.mxu0 %v1954_v46 }
 0x66b   :  { %1800 = vmatprep.subr.bf16.mxu1 %v2613_v33 }
 0x66d   :  { %1251 = vmatpush1.bf16.msra.mxu0 %v1955_v53 }
 0x66e   :  { %1801 = vmatpush3.bf16.msra.mxu1 %v1956_v5  ;;  %1252 = vmatprep.subr.bf16.mxu0 %v1957_v3 }
 0x66f   :  { %1802 = vmatprep.subr.bf16.mxu1 %v2613_v33 }
 0x671   :  { %1253 = vmatpush1.bf16.msra.mxu0 %v1958_v60 }
 0x672   :  { %1803 = vmatpush3.bf16.msra.mxu1 %v1959_v11  ;;  %1254 = vmatprep.subr.bf16.mxu0 %v1960_v48 }
 0x673   :  { %1804 = vmatprep.subr.bf16.mxu1 %v2613_v33 }
 0x675   :  { %1255 = vmatpush1.bf16.msra.mxu0 %v1961_v12  ;;  %v1366_v12 = vpop.xlane.xlu0 %1365 }
 0x676   :  { %1805 = vmatpush3.bf16.msra.mxu1 %v1962_v14  ;;  %v1370_v14 = vpop.xlane.xlu1 %1369 }
 0x72b   :  { %v1162_v52 = vpop.f32.mrb[40].mxu0 }
 0x72c   :  { %v1209_v62 = vadd.f32 %v1162_v52, %v2615_v51  ;;  %v1203_v54 = vpop.f32.mrb[32].mxu1  ;;  %v1164_v50 = vpop.f32.mrb[41].mxu0  ;;  %v2620_v52 = vlaneseq }
 0x72d   :  { %v1216_v55 = vadd.f32 %v1164_v50, %v2616_v59  ;;  %v1788_v56 = vpop.f32.mrb[33].mxu1  ;;  %v1166_v63 = vpop.f32.mrb[42].mxu0  ;;  %v1223_v22 = vadd.f32 %v2294_v43, %v1203_v54  ;;  %v2621_v54 = vld [vmem:[#allocation11_spill] sm:$0xff] }
 0x72e   :  { %v1557_v49 = vmul.f32 -1.442695, %v1209_v62  ;;  %v1206_v1 = vpop.f32.mrb[34].mxu1  ;;  %v1167_v6 = vpop.f32.mrb[43].mxu0  ;;  %v1390_v51 = vand.u32 127, %v2620_v52 }
 0x72f   :  { %v1789_v17 = vpop.f32.mrb[35].mxu1  ;;  %v1558_v15 = vmul.f32 -1.442695, %v1216_v55  ;;  %v1372_v62 = vpop.xlane.xlu1 %1371 }
 0x730   :  { %1917 = vpow2.f32 %v1557_v49  ;;  %v1393_v50 = vsub.s32 %v1390_v51, %v2621_v54 }
 0x731   :  { %1919 = vpow2.f32 %v1558_v15 }
 0x732   :  { %v1402_v56 = vrot.slane %v1370_v14, %v1393_v50  ;;  %v1394_v49 = vrot.slane %v1366_v12, %v1393_v50  ;;  %v1406_v1 = vrot.slane %v1372_v62, %v1393_v50 }
 0x733   :  { %v1376_v63 = vpop.xlane.xlu1 %1375 }
 0x734   :  { %v1414_v15 = vrot.slane %v1376_v63, %v1393_v50 }
 0x73a   :  { %v1918_v33 = vpop.eup %1917 }
 0x73b   :  { %v1213_v18 = vadd.f32 1.0, %v1918_v33  ;;  %v1920_v20 = vpop.eup %1919 }
 0x73c   :  { %v1220_v21 = vadd.f32 1.0, %v1920_v20 }
 0x73d   :  { %1921 = vrcp.f32 %v1213_v18 }
 0x73e   :  { %1923 = vrcp.f32 %v1220_v21 }
 0x747   :  { %v1922_v23 = vpop.eup %1921 }
 0x748   :  { %v1224_v24 = vmul.f32 %v1922_v23, %v1223_v22  ;;  %v1924_v28 = vpop.eup %1923 }
 0x749   :  { %v1227_v29 = vsub.f32 1.0, %v1924_v28  ;;  %v1229_v32 = vmul.f32 %v1924_v28, %v2543_v8  ;;  %v1471_v28 = vstv %s2599_s6 }
 0x74a   :  { %v1225_v27 = vadd.f32 %v1224_v24, %v2617_v26 }
 0x74c   :  { %1925 = vtanh.f32 %v1225_v27 }
 0x756   :  { %v1926_v30 = vpop.eup %1925 }
 0x757   :  { %v1228_v31 = vmul.f32 %v1926_v30, %v1227_v29 }
 0x759   :  { %v1230_v34 = vadd.f32 %v1229_v32, %v1228_v31 }
 0x75b   :  { %v1363_v36 = vmul.f32 %v2302_v40, %v1230_v34  ;;  %v1239_v37 = vpack.c.bf16 %v1230_v34, %v1230_v34 }
 0x75d   :  { %1377 = vadd.xlane.f32.xlu0 %v1363_v36  ;;  %1273 = vmatmul.mubr.bf16.vlgmr.msra.gmra.mrb[44].mxu0 %v1239_v37 }
 0x75e   :  { %1807 = vmatmul.mubr.bf16.vlgmr.msra.gmra.mrb[36].mxu1 %v1239_v37 }
 0x830   :  { %v1274_v35 = vpop.f32.mrb[44].mxu0 }
 0x831   :  { %v1321_v58 = vadd.f32 %v1274_v35, %v2618_v0  ;;  %v1315_v47 = vpop.f32.mrb[36].mxu1  ;;  %v1276_v4 = vpop.f32.mrb[45].mxu0 }
 0x832   :  { %v1328_v44 = vadd.f32 %v1276_v4, %v2289_v25  ;;  %v1808_v38 = vpop.f32.mrb[37].mxu1  ;;  %v1278_v61 = vpop.f32.mrb[46].mxu0  ;;  %v1335_v19 = vadd.f32 %v2294_v43, %v1315_v47  ;;  %v2619_v25 = vld [vmem:[#allocation13_spill] sm:$0xff] }
 0x833   :  { %v1559_v7 = vmul.f32 -1.442695, %v1321_v58  ;;  %v1318_v9 = vpop.f32.mrb[38].mxu1  ;;  %v1279_v10 = vpop.f32.mrb[47].mxu0 }
 0x834   :  { %v1809_v8 = vpop.f32.mrb[39].mxu1  ;;  %v1560_v57 = vmul.f32 -1.442695, %v1328_v44  ;;  %v1368_v43 = vpop.xlane.xlu0 %1367 }
 0x835   :  { %1927 = vpow2.f32 %v1559_v7  ;;  %v1398_v55 = vrot.slane %v1368_v43, %v1393_v50 }
 0x836   :  { %1929 = vpow2.f32 %v1560_v57 }
 0x837   :  { %v1424_v17 = vsel %vm1423_vm3, %v1398_v55, %v1394_v49 }
 0x838   :  { %v1374_v59 = vpop.xlane.xlu0 %1373  ;;  %v1426_v33 = vsel %vm1425_vm4, %v1402_v56, %v1424_v17 }
 0x839   :  { %v1428_v20 = vsel %vm1427_vm5, %v1406_v1, %v1426_v33 }
 0x83c   :  { %v1378_v6 = vpop.xlane.xlu0 %1377 }
 0x83d   :  { %v1418_v18 = vrot.slane %v1378_v6, %v1393_v50 }
 0x83f   :  { %v1928_v13 = vpop.eup %1927 }
 0x840   :  { %v1325_v2 = vadd.f32 1.0, %v1928_v13  ;;  %v1930_v42 = vpop.eup %1929 }
 0x841   :  { %v1332_v41 = vadd.f32 1.0, %v1930_v42 }
 0x842   :  { %1931 = vrcp.f32 %v1325_v2 }
 0x843   :  { %1933 = vrcp.f32 %v1332_v41 }
 0x84c   :  { %v1932_v16 = vpop.eup %1931 }
 0x84d   :  { %v1336_v39 = vmul.f32 %v1932_v16, %v1335_v19  ;;  %v1934_v46 = vpop.eup %1933 }
 0x84e   :  { %v1339_v53 = vsub.f32 1.0, %v1934_v46  ;;  %v1341_v60 = vmul.f32 %v1934_v46, %v1230_v34 }
 0x84f   :  { %v1337_v45 = vadd.f32 %v1336_v39, %v2619_v25 }
 0x851   :  { %1935 = vtanh.f32 %v1337_v45 }
 0x85b   :  { %v1936_v5 = vpop.eup %1935 }
 0x85c   :  { %v1340_v3 = vmul.f32 %v1936_v5, %v1339_v53 }
 0x85e   :  { %v1342_v11 = vadd.f32 %v1341_v60, %v1340_v3 }
 0x860   :  { %v1364_v48 = vmul.f32 %v2302_v40, %v1342_v11  ;;  %v1410_v40 = vrot.slane %v1374_v59, %v1393_v50 }
 0x862   :  { %1379 = vadd.xlane.f32.xlu1 %v1364_v48  ;;  %v1430_v21 = vsel %vm1429_vm6, %v1410_v40, %v1428_v20 }
 0x863   :  { %v1432_v24 = vsel %vm1431_vm7, %v1414_v15, %v1430_v21 }
 0x864   :  { %v1434_v26 = vsel %vm1433_vm8, %v1418_v18, %v1432_v24 }
 0x8ef   :  { %v1380_v22 = vpop.xlane.xlu1 %1379 }
 0x8f0   :  { %v1422_v23 = vrot.slane %v1380_v22, %v1393_v50 }
 0x8f2   :  { %v1436_v27 = vsel %vm1435_vm9, %v1422_v23, %v1434_v26 }
 0x8f3   :  { %1438 = vxpose.xlu0.b32.start.end [1/1] (short) (narrow) %v1436_v27, 8 }
 0x973   :  { %v1454_v29 = vpop.trf.xlu0 }
 0x974   :  { %v1472_v30 = vadd.f32 %v1471_v28, %v1454_v29 }
 0x976   :  { %v1474_v31 = vmin.f32 %v1472_v30, 0.0  ;;  %vm1473_vm10 = vcmp.gt.f32.partialorder %v1472_v30, 0.0 }
 0x978   :  { %v1475_v32 = vmul.f32 1.442695, %v1474_v31 }
 0x97a   :  { %1937 = vpow2.f32 %v1475_v32 }
 0x984   :  { %v1938_v34 = vpop.eup %1937 }
 0x985   :  { %v1562_v36 = vadd.f32 -1.0, %v1938_v34 }
 0x987   :  { %v1478_v37 = vmul.f32 1.6732632, %v1562_v36 }
 0x989   :  { %v1479_v35 = vsel %vm1473_vm10, %v1472_v30, %v1478_v37 }
 0x98a   :  { %v1480_v0 = vmul.f32 1.050701, %v1479_v35 }
 0x98c   :  { %1481 = vst.msk [vmem:[#allocation8] sm:$0xff] %vm98_vm1, %v1480_v0 }
 0x98d   :  { %1996 = shalt.err (!%p1993_p12)
}
 0x98e   :  { %s1997_s12 = scalar_lea.hbm %s2600_s7, 128 }
 0x98f   :  { %p1998_p13 = scmp.ne.s32.totalorder %s2600_s7, %s1997_s12  ;;  %p2001_p0 = scmp.lt.u32.totalorder %s1997_s12, %s2600_s7 }
 0x991   :  { %p2003_p1 = pnand %p2001_p0, %p1998_p13 }
 0x993   :  { %2006 = shalt.err (!%p2003_p1)
}
 0x994   :  { %1491 = dma.vmem_to_hbm [thread:$0]  %s1489_s9, 128, %s2600_s7, [#allocation7]  }
 0x995   :  { %2009 = dma.done.wait [#allocation7], 128  }
 0x996   :  { %2010 = vsyncadd [#allocation7], 4294967168 }
 0x997   :  { %1495 = vsyncpa [#allocation6], 1 }
 0x998   :  { %1496 = vsyncpa [#allocation7], 1 }

</bundles_post_ra>
